<compile_context>
chip_gen: v7x
topology: tpu7x:2x2x1
jax: 0.10.0
libtpu: 0.0.40
codegen_flags: <defaults>
</compile_context>

<pallas_src>
import math

import numpy as np
import jax
import jax.numpy as jnp
from jax.experimental import pallas as pl
from jax.experimental.pallas import tpu as pltpu


def _is_pow2(v):
    return v > 0 and (v & (v - 1)) == 0


# ---------------------------------------------------------------------------
# Fused kernel: conv3x3 (VPU roll-taps) + optional resize (one MXU matmul)
# + exact branch softmax, for Nb images per grid step.
# ---------------------------------------------------------------------------
def _make_fused_kernel(cin, cout, H, W, Nb, THW, m_rows, need_resize, use_iota):
    HWimg = H * W
    L = Nb * HWimg
    nrows = Nb * cout

    def kernel(*refs):
        refs = list(refs)
        x_ref = refs.pop(0)
        w_ref = refs.pop(0)
        b_ref = refs.pop(0)
        pc_ref = None if use_iota else refs.pop(0)
        m_ref = refs.pop(0) if need_resize else None
        o_ref = refs.pop(0)
        yscr_ref = refs.pop(0) if need_resize else None

        x = x_ref[0].astype(jnp.float32)          # (Cin, Nb*H*W) lane-dense slab
        w_all = w_ref[...].astype(jnp.float32)    # (Cin, Cout*9), loaded ONCE

        # Per-lane pixel-within-image / column index for the conv boundary
        # masks.  Power-of-two H,W: pure iota + bitwise ops (no DMA stream).
        if use_iota:
            g = jax.lax.broadcasted_iota(jnp.int32, (1, L), 1)
            p = jnp.bitwise_and(g, HWimg - 1)     # flattened index inside image
            col = jnp.bitwise_and(g, W - 1)
        else:
            p = pc_ref[0:1, :]
            col = pc_ref[1:2, :]
        row_ok_m1 = p >= W                        # shift dh = -1 stays in bounds
        row_ok_p1 = p < (H - 1) * W               # shift dh = +1 stays in bounds
        col_ok_m1 = col >= 1
        col_ok_p1 = col < (W - 1)

        # ---- 3x3 conv, stride 1, zero padding 1, on the VPU ----------------
        # out[b] = bias[b] + sum_{dh,dw,c} w[b,c,dh,dw] * shift(x[c], dh, dw)
        # One pltpu.roll per tap on the flattened axis (XLU slot) + boundary
        # mask (VPU).  Image boundaries inside the concatenated lane axis are
        # always masked positions, so images never contaminate each other.
        accs = [None] * cout
        tap = 0
        for dh in (-1, 0, 1):
            for dw in (-1, 0, 1):
                shift = dh * W + dw
                if shift == 0:
                    xs = x
                else:
                    rolled = pltpu.roll(x, shift=(-shift) % L, axis=1)
                    mask = None
                    for cond, use in ((row_ok_m1, dh == -1),
                                      (row_ok_p1, dh == 1),
                                      (col_ok_m1, dw == -1),
                                      (col_ok_p1, dw == 1)):
                        if use:
                            mask = cond if mask is None else jnp.logical_and(mask, cond)
                    xs = jnp.where(mask, rolled, 0.0)
                for b in range(cout):
                    c0 = b * 9 + tap
                    wc = w_all[:, c0:c0 + 1]      # (Cin, 1) register slice
                    contrib = wc * xs             # lane-broadcast FMA on the VPU
                    accs[b] = contrib if accs[b] is None else accs[b] + contrib
                tap += 1

        # Reduce the tiny Cin sublane axis; add the bias scalar (SMEM).
        planes = [jnp.sum(accs[b], axis=0, keepdims=True) + b_ref[b]
                  for b in range(cout)]           # cout x (1, Nb*H*W)

        if not need_resize:
            # ---- exact softmax across branch planes (all images at once) ---
            mx = planes[0]
            for pb in planes[1:]:
                mx = jnp.maximum(mx, pb)
            es = [jnp.exp(pb - mx) for pb in planes]
            s = es[0]
            for e in es[1:]:
                s = s + e
            inv = 1.0 / s                          # exact reciprocal
            for b in range(cout):
                o_ref[0, b:b + 1, :] = (es[b] * inv).astype(o_ref.dtype)
            return

        # ---- FeatureResize: one shared (H*W, th*tw) linear map -------------
        # LHS rows (one per image x branch) are accumulated straight into a
        # VMEM scratch -- no concatenate / pad relayouts.
        if m_rows > nrows:
            yscr_ref[nrows:m_rows, :] = jnp.zeros((m_rows - nrows, HWimg),
                                                  jnp.float32)
        for i in range(Nb):
            lo = i * HWimg
            for b in range(cout):
                r_idx = i * cout + b
                yscr_ref[r_idx:r_idx + 1, :] = planes[b][:, lo:lo + HWimg]
        y = yscr_ref[...]                          # (m_rows, H*W)
        r = jnp.dot(y, m_ref[...], preferred_element_type=jnp.float32)

        # ---- exact softmax per image across its cout rows, row-wise stores -
        for i in range(Nb):
            rows = [r[i * cout + b: i * cout + b + 1, :] for b in range(cout)]
            mx = rows[0]
            for pb in rows[1:]:
                mx = jnp.maximum(mx, pb)
            es = [jnp.exp(pb - mx) for pb in rows]
            s = es[0]
            for e in es[1:]:
                s = s + e
            inv = 1.0 / s                          # exact reciprocal
            for b in range(cout):
                o_ref[0, b:b + 1, i * THW:(i + 1) * THW] = \
                    (es[b] * inv).astype(o_ref.dtype)

    return kernel


# ---------------------------------------------------------------------------
# Host-side resize matrices (FeatureResize semantics), built separably.
# ---------------------------------------------------------------------------
def _resize_matrix(in_len, out_len, mode):
    m = np.zeros((in_len, out_len), np.float32)
    if mode == "nearest":                 # F.interpolate(mode='nearest')
        for o in range(out_len):
            m[(o * in_len) // out_len, o] = 1.0
    else:                                 # F.adaptive_avg_pool2d
        for o in range(out_len):
            s = (o * in_len) // out_len
            e = -(-((o + 1) * in_len) // out_len)
            m[s:e, o] = 1.0 / (e - s)
    return m


def _blk_bytes(shape, itemsize=4):
    s = list(shape)
    s[-1] = -(-s[-1] // 128) * 128
    if len(s) >= 2:
        s[-2] = -(-s[-2] // 8) * 8
    n = 1
    for d in s:
        n *= d
    return n * itemsize


# ---------------------------------------------------------------------------
# Fused forward wrapper.
# ---------------------------------------------------------------------------
def adaptive_fusion_forward(x_nchw, weight_oihw, bias, output_resolution):
    """Fused conv3x3 + FeatureResize + branch softmax.

    x_nchw:      (N, Cin, H, W) float32
    weight_oihw: (Cout, Cin, 3, 3)   -- PyTorch Conv2d layout
    bias:        (Cout,)
    returns:     (N, Cout, th, tw) float32, softmax-normalized over Cout.
    """
    N, cin, H, W = x_nchw.shape
    cout = weight_oihw.shape[0]
    th, tw = int(output_resolution[0]), int(output_resolution[1])
    HWimg, THW = H * W, th * tw

    # Fewer, fatter grid steps: whole batch in one step for small N (best for
    # single-TC v5e/v6e), two parallel blocks when N >= 4 so v7x's two
    # TensorCores both get work.
    num_blocks = 2 if (N >= 4 and N % 2 == 0) else 1
    Nb = N // num_blocks
    L = Nb * HWimg

    # (N, Cin, H, W) -> (num_blocks, Cin, Nb*H*W): channels on sublanes, the
    # Nb images of each block concatenated on the 128-lane axis (wrapper-side
    # layout plumbing only).
    x_lane = (x_nchw.reshape(num_blocks, Nb, cin, HWimg)
              .transpose(0, 2, 1, 3)
              .reshape(num_blocks, cin, L)
              .astype(jnp.float32))

    # Torch (Cout, Cin, 3, 3) -> compact (Cin, Cout*9) tile; column = b*9 + tap.
    w_tile = (jnp.transpose(weight_oihw, (1, 0, 2, 3))
              .reshape(cin, cout * 9).astype(jnp.float32))
    bias = bias.astype(jnp.float32)

    use_iota = _is_pow2(H) and _is_pow2(W)
    need_resize = not (th == H and tw == W)

    args = [x_lane, w_tile, bias]
    in_specs = [
        pl.BlockSpec((1, cin, L), lambda g: (g, 0, 0)),
        pl.BlockSpec((cin, cout * 9), lambda g: (0, 0)),
        pl.BlockSpec(memory_space=pltpu.MemorySpace.SMEM),   # bias scalars
    ]
    if not use_iota:
        # Fallback for non-power-of-two H/W: tiny precomputed per-lane indices.
        pidx = np.tile(np.arange(HWimg, dtype=np.int32), Nb)
        cidx = np.tile(np.tile(np.arange(W, dtype=np.int32), H), Nb)
        args.append(jnp.asarray(np.stack([pidx, cidx])))      # (2, Nb*H*W)
        in_specs.append(pl.BlockSpec((2, L), lambda g: (0, 0)))

    scratch_shapes = []
    m_rows = -(-(Nb * cout) // 8) * 8
    if need_resize:
        # Same branching as the reference FeatureResize helper.
        if H < th or W < tw:
            mh = _resize_matrix(H, th, "nearest")
            mw = _resize_matrix(W, tw, "nearest")
        else:
            mh = _resize_matrix(H, th, "avg")
            mw = _resize_matrix(W, tw, "avg")
        # Built separably, combined for the single in-kernel matmul; for large
        # H*W*th*tw this should become a true separable two-matmul path.
        args.append(jnp.asarray(np.kron(mh, mw)))             # (H*W, th*tw)
        in_specs.append(pl.BlockSpec((HWimg, THW), lambda g: (0, 0)))
        scratch_shapes.append(pltpu.VMEM((m_rows, HWimg), jnp.float32))

    out_L = Nb * THW
    out_spec = pl.BlockSpec((1, cout, out_L), lambda g: (g, 0, 0))

    kernel = _make_fused_kernel(cin, cout, H, W, Nb, THW, m_rows,
                                need_resize, use_iota)

    # Explicit VMEM budget from the actual block sizes (v7x: 64 MiB total).
    vmem_est = 2 * (_blk_bytes((1, cin, L)) + _blk_bytes((cin, cout * 9))
                    + _blk_bytes((1, cout, out_L)))
    if not use_iota:
        vmem_est += 2 * _blk_bytes((2, L))
    if need_resize:
        vmem_est += 2 * _blk_bytes((HWimg, THW)) + _blk_bytes((m_rows, HWimg))
    vmem_limit = int(max(vmem_est + (4 << 20), 16 << 20))

    y = pl.pallas_call(
        kernel,
        out_shape=jax.ShapeDtypeStruct((num_blocks, cout, out_L), jnp.float32),
        grid=(num_blocks,),
        in_specs=in_specs,
        out_specs=out_spec,
        scratch_shapes=scratch_shapes,
        compiler_params=pltpu.CompilerParams(
            dimension_semantics=("parallel",),    # Megacore across blocks (v7x)
            vmem_limit_bytes=vmem_limit),
    )(*args)

    # (num_blocks, Cout, Nb*th*tw) -> (N, Cout, th, tw): layout plumbing only.
    y = (y.reshape(num_blocks, cout, Nb, th, tw)
           .transpose(0, 2, 1, 3, 4)
           .reshape(N, cout, th, tw))
    return y


# ---------------------------------------------------------------------------
# Module wrapper (mirrors the PyTorch AdaptiveFusionModule interface).
# ---------------------------------------------------------------------------
class AdaptiveFusionModulePallas:
    def __init__(self, in_channels, num_branches, key):
        k1, k2 = jax.random.split(key)
        fan_in = in_channels * 3 * 3
        bound = 1.0 / math.sqrt(fan_in)
        # Weights kept in PyTorch Conv2d layout (Cout, Cin, 3, 3) so torch
        # checkpoints load 1:1; the wrapper converts to the kernel layout.
        self.weight = jax.random.uniform(
            k1, (num_branches, in_channels, 3, 3), jnp.float32, -bound, bound)
        self.bias = jax.random.uniform(
            k2, (num_branches,), jnp.float32, -bound, bound)
        self.num_branches = num_branches

    def __call__(self, x_nchw, output_resolution):
        th, tw = int(output_resolution[0]), int(output_resolution[1])
        y = adaptive_fusion_forward(x_nchw, self.weight, self.bias, (th, tw))
        # Equivalent to the reference's permute(1,0,2,3).unsqueeze(2) + split.
        return [y[:, b:b + 1] for b in range(self.num_branches)]


# ---------------------------------------------------------------------------
# Pure-JAX reference (for verification only).
# ---------------------------------------------------------------------------
def _reference_forward(x, weight, bias, output_resolution):
    y = jax.lax.conv_general_dilated(
        x, weight, window_strides=(1, 1), padding=((1, 1), (1, 1)),
        dimension_numbers=("NCHW", "OIHW", "NCHW"),
        precision=jax.lax.Precision.HIGHEST)
    y = y + bias[None, :, None, None]
    H, W = y.shape[2], y.shape[3]
    th, tw = int(output_resolution[0]), int(output_resolution[1])
    if (H, W) == (th, tw):
        pass
    elif H < th or W < tw:          # F.interpolate(mode='nearest')
        hi = (jnp.arange(th) * H) // th
        wi = (jnp.arange(tw) * W) // tw
        y = y[:, :, hi][:, :, :, wi]
    else:                           # F.adaptive_avg_pool2d
        rows = []
        for i in range(th):
            h0, h1 = (i * H) // th, -(-((i + 1) * H) // th)
            cols = []
            for j in range(tw):
                w0, w1 = (j * W) // tw, -(-((j + 1) * W) // tw)
                cols.append(jnp.mean(y[:, :, h0:h1, w0:w1], axis=(2, 3)))
            rows.append(jnp.stack(cols, axis=-1))
        y = jnp.stack(rows, axis=-2)
    y = jax.nn.softmax(y, axis=1)
    return [y[:, b:b + 1] for b in range(y.shape[1])]


if __name__ == "__main__":
    key = jax.random.PRNGKey(0)
    kx, kp = jax.random.split(key)

    N, Cin, H, W = 2, 4, 16, 16
    num_branches = 3

    x = jax.random.normal(kx, (N, Cin, H, W), jnp.float32)
    module = AdaptiveFusionModulePallas(Cin, num_branches, kp)

    # identity resize / adaptive-avg-pool downsample / nearest upsample
    for target, tol in (((16, 16), 2e-3), ((8, 8), 1e-2), ((32, 32), 1e-2)):
        out = [jax.block_until_ready(o) for o in module(x, target)]
        ref = _reference_forward(x, module.weight, module.bias, target)

        assert len(out) == num_branches
        for o, r in zip(out, ref):
            assert o.shape == (N, 1, target[0], target[1])
            assert bool(jnp.allclose(o, r, atol=tol, rtol=tol)), target
        # softmax over branches must sum to 1 at every pixel (exact reciprocal)
        total = sum(out)
        assert bool(jnp.allclose(total, jnp.ones_like(total), atol=2e-3)), target

    # Also exercise the multi-block grid path (num_blocks=2, Nb=2) once.
    x4 = jax.random.normal(kx, (4, Cin, H, W), jnp.float32)
    out4 = [jax.block_until_ready(o) for o in module(x4, (8, 8))]
    ref4 = _reference_forward(x4, module.weight, module.bias, (8, 8))
    for o, r in zip(out4, ref4):
        assert bool(jnp.allclose(o, r, atol=1e-2, rtol=1e-2))

    print("KERNEL_OK")
</pallas_src>

<mosaic_0001>
module attributes {stable_mosaic.version = 11 : i64} {
  func.func @kernel(%arg0: i32, %arg1: memref<1x4x512xf32, #tpu.memory_space<vmem>>, %arg2: memref<4x27xf32, #tpu.memory_space<vmem>>, %arg3: memref<3xf32, #tpu.memory_space<smem>>, %arg4: memref<1x3x512xf32, #tpu.memory_space<vmem>>) attributes {dimension_semantics = [#tpu.dimension_semantics<parallel>], iteration_bounds = array<i64: 1>, scalar_prefetch = 0 : i64, scratch_operands = 0 : i64, tpu.core_type = #tpu.core_type<tc>, window_params = [{transform_indices = @transform_0, window_bounds = array<i64: 1, 4, 512>}, {pipeline_mode = #tpu.pipeline_mode<synchronous>, transform_indices = @transform_1, window_bounds = array<i64: 4, 27>}, {transform_indices = @transform_2, window_bounds = array<i64: 3>}, {transform_indices = @transform_3, window_bounds = array<i64: 1, 3, 512>}]} {
    %c0 = arith.constant 0 : index
    %c0_0 = arith.constant 0 : index
    %c0_1 = arith.constant 0 : index
    %0 = vector.load %arg1[%c0, %c0_0, %c0_1] : memref<1x4x512xf32, #tpu.memory_space<vmem>>, vector<1x4x512xf32>
    %1 = vector.shape_cast %0 : vector<1x4x512xf32> to vector<4x512xf32>
    %c0_2 = arith.constant 0 : index
    %c0_3 = arith.constant 0 : index
    %2 = vector.load %arg2[%c0_2, %c0_3] : memref<4x27xf32, #tpu.memory_space<vmem>>, vector<4x27xf32>
    %3 = tpu.iota {dimensions = array<i32: 1>} : vector<1x512xi32>
    %c255_i32 = arith.constant 255 : i32
    %4 = vector.broadcast %c255_i32 : i32 to vector<1x512xi32>
    %5 = arith.andi %3, %4 : vector<1x512xi32>
    %c15_i32 = arith.constant 15 : i32
    %6 = vector.broadcast %c15_i32 : i32 to vector<1x512xi32>
    %7 = arith.andi %3, %6 : vector<1x512xi32>
    %c16_i32 = arith.constant 16 : i32
    %8 = vector.broadcast %c16_i32 : i32 to vector<1x512xi32>
    %9 = arith.cmpi sge, %5, %8 : vector<1x512xi32>
    %c240_i32 = arith.constant 240 : i32
    %10 = vector.broadcast %c240_i32 : i32 to vector<1x512xi32>
    %11 = arith.cmpi slt, %5, %10 : vector<1x512xi32>
    %c1_i32 = arith.constant 1 : i32
    %12 = vector.broadcast %c1_i32 : i32 to vector<1x512xi32>
    %13 = arith.cmpi sge, %7, %12 : vector<1x512xi32>
    %c15_i32_4 = arith.constant 15 : i32
    %14 = vector.broadcast %c15_i32_4 : i32 to vector<1x512xi32>
    %15 = arith.cmpi slt, %7, %14 : vector<1x512xi32>
    %c17_i32 = arith.constant 17 : i32
    %16 = tpu.dynamic_rotate %1 by %c17_i32 dim 1 : vector<4x512xf32>, i32 -> vector<4x512xf32>
    %17 = arith.andi %9, %13 : vector<1x512xi1>
    %cst = arith.constant 0.000000e+00 : f32
    %18 = vector.shape_cast %17 : vector<1x512xi1> to vector<1x512xi1>
    %19 = vector.broadcast %18 : vector<1x512xi1> to vector<4x512xi1>
    %20 = vector.broadcast %cst : f32 to vector<4x512xf32>
    %21 = arith.select %19, %16, %20 : vector<4x512xi1>, vector<4x512xf32>
    %22 = vector.extract_strided_slice %2 {offsets = [0, 0], sizes = [4, 1], strides = [1, 1]} : vector<4x27xf32> to vector<4x1xf32>
    %23 = vector.broadcast %22 : vector<4x1xf32> to vector<4x512xf32>
    %24 = arith.mulf %23, %21 : vector<4x512xf32>
    %25 = vector.extract_strided_slice %2 {offsets = [0, 9], sizes = [4, 1], strides = [1, 1]} : vector<4x27xf32> to vector<4x1xf32>
    %26 = vector.broadcast %25 : vector<4x1xf32> to vector<4x512xf32>
    %27 = arith.mulf %26, %21 : vector<4x512xf32>
    %28 = vector.extract_strided_slice %2 {offsets = [0, 18], sizes = [4, 1], strides = [1, 1]} : vector<4x27xf32> to vector<4x1xf32>
    %29 = vector.broadcast %28 : vector<4x1xf32> to vector<4x512xf32>
    %30 = arith.mulf %29, %21 : vector<4x512xf32>
    %c16_i32_5 = arith.constant 16 : i32
    %31 = tpu.dynamic_rotate %1 by %c16_i32_5 dim 1 : vector<4x512xf32>, i32 -> vector<4x512xf32>
    %cst_6 = arith.constant 0.000000e+00 : f32
    %32 = vector.shape_cast %9 : vector<1x512xi1> to vector<1x512xi1>
    %33 = vector.broadcast %32 : vector<1x512xi1> to vector<4x512xi1>
    %34 = vector.broadcast %cst_6 : f32 to vector<4x512xf32>
    %35 = arith.select %33, %31, %34 : vector<4x512xi1>, vector<4x512xf32>
    %36 = vector.extract_strided_slice %2 {offsets = [0, 1], sizes = [4, 1], strides = [1, 1]} : vector<4x27xf32> to vector<4x1xf32>
    %37 = vector.broadcast %36 : vector<4x1xf32> to vector<4x512xf32>
    %38 = arith.mulf %37, %35 : vector<4x512xf32>
    %39 = arith.addf %24, %38 : vector<4x512xf32>
    %40 = vector.extract_strided_slice %2 {offsets = [0, 10], sizes = [4, 1], strides = [1, 1]} : vector<4x27xf32> to vector<4x1xf32>
    %41 = vector.broadcast %40 : vector<4x1xf32> to vector<4x512xf32>
    %42 = arith.mulf %41, %35 : vector<4x512xf32>
    %43 = arith.addf %27, %42 : vector<4x512xf32>
    %44 = vector.extract_strided_slice %2 {offsets = [0, 19], sizes = [4, 1], strides = [1, 1]} : vector<4x27xf32> to vector<4x1xf32>
    %45 = vector.broadcast %44 : vector<4x1xf32> to vector<4x512xf32>
    %46 = arith.mulf %45, %35 : vector<4x512xf32>
    %47 = arith.addf %30, %46 : vector<4x512xf32>
    %c15_i32_7 = arith.constant 15 : i32
    %48 = tpu.dynamic_rotate %1 by %c15_i32_7 dim 1 : vector<4x512xf32>, i32 -> vector<4x512xf32>
    %49 = arith.andi %9, %15 : vector<1x512xi1>
    %cst_8 = arith.constant 0.000000e+00 : f32
    %50 = vector.shape_cast %49 : vector<1x512xi1> to vector<1x512xi1>
    %51 = vector.broadcast %50 : vector<1x512xi1> to vector<4x512xi1>
    %52 = vector.broadcast %cst_8 : f32 to vector<4x512xf32>
    %53 = arith.select %51, %48, %52 : vector<4x512xi1>, vector<4x512xf32>
    %54 = vector.extract_strided_slice %2 {offsets = [0, 2], sizes = [4, 1], strides = [1, 1]} : vector<4x27xf32> to vector<4x1xf32>
    %55 = vector.broadcast %54 : vector<4x1xf32> to vector<4x512xf32>
    %56 = arith.mulf %55, %53 : vector<4x512xf32>
    %57 = arith.addf %39, %56 : vector<4x512xf32>
    %58 = vector.extract_strided_slice %2 {offsets = [0, 11], sizes = [4, 1], strides = [1, 1]} : vector<4x27xf32> to vector<4x1xf32>
    %59 = vector.broadcast %58 : vector<4x1xf32> to vector<4x512xf32>
    %60 = arith.mulf %59, %53 : vector<4x512xf32>
    %61 = arith.addf %43, %60 : vector<4x512xf32>
    %62 = vector.extract_strided_slice %2 {offsets = [0, 20], sizes = [4, 1], strides = [1, 1]} : vector<4x27xf32> to vector<4x1xf32>
    %63 = vector.broadcast %62 : vector<4x1xf32> to vector<4x512xf32>
    %64 = arith.mulf %63, %53 : vector<4x512xf32>
    %65 = arith.addf %47, %64 : vector<4x512xf32>
    %c1_i32_9 = arith.constant 1 : i32
    %66 = tpu.dynamic_rotate %1 by %c1_i32_9 dim 1 : vector<4x512xf32>, i32 -> vector<4x512xf32>
    %cst_10 = arith.constant 0.000000e+00 : f32
    %67 = vector.shape_cast %13 : vector<1x512xi1> to vector<1x512xi1>
    %68 = vector.broadcast %67 : vector<1x512xi1> to vector<4x512xi1>
    %69 = vector.broadcast %cst_10 : f32 to vector<4x512xf32>
    %70 = arith.select %68, %66, %69 : vector<4x512xi1>, vector<4x512xf32>
    %71 = vector.extract_strided_slice %2 {offsets = [0, 3], sizes = [4, 1], strides = [1, 1]} : vector<4x27xf32> to vector<4x1xf32>
    %72 = vector.broadcast %71 : vector<4x1xf32> to vector<4x512xf32>
    %73 = arith.mulf %72, %70 : vector<4x512xf32>
    %74 = arith.addf %57, %73 : vector<4x512xf32>
    %75 = vector.extract_strided_slice %2 {offsets = [0, 12], sizes = [4, 1], strides = [1, 1]} : vector<4x27xf32> to vector<4x1xf32>
    %76 = vector.broadcast %75 : vector<4x1xf32> to vector<4x512xf32>
    %77 = arith.mulf %76, %70 : vector<4x512xf32>
    %78 = arith.addf %61, %77 : vector<4x512xf32>
    %79 = vector.extract_strided_slice %2 {offsets = [0, 21], sizes = [4, 1], strides = [1, 1]} : vector<4x27xf32> to vector<4x1xf32>
    %80 = vector.broadcast %79 : vector<4x1xf32> to vector<4x512xf32>
    %81 = arith.mulf %80, %70 : vector<4x512xf32>
    %82 = arith.addf %65, %81 : vector<4x512xf32>
    %83 = vector.extract_strided_slice %2 {offsets = [0, 4], sizes = [4, 1], strides = [1, 1]} : vector<4x27xf32> to vector<4x1xf32>
    %84 = vector.broadcast %83 : vector<4x1xf32> to vector<4x512xf32>
    %85 = arith.mulf %84, %1 : vector<4x512xf32>
    %86 = arith.addf %74, %85 : vector<4x512xf32>
    %87 = vector.extract_strided_slice %2 {offsets = [0, 13], sizes = [4, 1], strides = [1, 1]} : vector<4x27xf32> to vector<4x1xf32>
    %88 = vector.broadcast %87 : vector<4x1xf32> to vector<4x512xf32>
    %89 = arith.mulf %88, %1 : vector<4x512xf32>
    %90 = arith.addf %78, %89 : vector<4x512xf32>
    %91 = vector.extract_strided_slice %2 {offsets = [0, 22], sizes = [4, 1], strides = [1, 1]} : vector<4x27xf32> to vector<4x1xf32>
    %92 = vector.broadcast %91 : vector<4x1xf32> to vector<4x512xf32>
    %93 = arith.mulf %92, %1 : vector<4x512xf32>
    %94 = arith.addf %82, %93 : vector<4x512xf32>
    %c511_i32 = arith.constant 511 : i32
    %95 = tpu.dynamic_rotate %1 by %c511_i32 dim 1 : vector<4x512xf32>, i32 -> vector<4x512xf32>
    %cst_11 = arith.constant 0.000000e+00 : f32
    %96 = vector.shape_cast %15 : vector<1x512xi1> to vector<1x512xi1>
    %97 = vector.broadcast %96 : vector<1x512xi1> to vector<4x512xi1>
    %98 = vector.broadcast %cst_11 : f32 to vector<4x512xf32>
    %99 = arith.select %97, %95, %98 : vector<4x512xi1>, vector<4x512xf32>
    %100 = vector.extract_strided_slice %2 {offsets = [0, 5], sizes = [4, 1], strides = [1, 1]} : vector<4x27xf32> to vector<4x1xf32>
    %101 = vector.broadcast %100 : vector<4x1xf32> to vector<4x512xf32>
    %102 = arith.mulf %101, %99 : vector<4x512xf32>
    %103 = arith.addf %86, %102 : vector<4x512xf32>
    %104 = vector.extract_strided_slice %2 {offsets = [0, 14], sizes = [4, 1], strides = [1, 1]} : vector<4x27xf32> to vector<4x1xf32>
    %105 = vector.broadcast %104 : vector<4x1xf32> to vector<4x512xf32>
    %106 = arith.mulf %105, %99 : vector<4x512xf32>
    %107 = arith.addf %90, %106 : vector<4x512xf32>
    %108 = vector.extract_strided_slice %2 {offsets = [0, 23], sizes = [4, 1], strides = [1, 1]} : vector<4x27xf32> to vector<4x1xf32>
    %109 = vector.broadcast %108 : vector<4x1xf32> to vector<4x512xf32>
    %110 = arith.mulf %109, %99 : vector<4x512xf32>
    %111 = arith.addf %94, %110 : vector<4x512xf32>
    %c497_i32 = arith.constant 497 : i32
    %112 = tpu.dynamic_rotate %1 by %c497_i32 dim 1 : vector<4x512xf32>, i32 -> vector<4x512xf32>
    %113 = arith.andi %11, %13 : vector<1x512xi1>
    %cst_12 = arith.constant 0.000000e+00 : f32
    %114 = vector.shape_cast %113 : vector<1x512xi1> to vector<1x512xi1>
    %115 = vector.broadcast %114 : vector<1x512xi1> to vector<4x512xi1>
    %116 = vector.broadcast %cst_12 : f32 to vector<4x512xf32>
    %117 = arith.select %115, %112, %116 : vector<4x512xi1>, vector<4x512xf32>
    %118 = vector.extract_strided_slice %2 {offsets = [0, 6], sizes = [4, 1], strides = [1, 1]} : vector<4x27xf32> to vector<4x1xf32>
    %119 = vector.broadcast %118 : vector<4x1xf32> to vector<4x512xf32>
    %120 = arith.mulf %119, %117 : vector<4x512xf32>
    %121 = arith.addf %103, %120 : vector<4x512xf32>
    %122 = vector.extract_strided_slice %2 {offsets = [0, 15], sizes = [4, 1], strides = [1, 1]} : vector<4x27xf32> to vector<4x1xf32>
    %123 = vector.broadcast %122 : vector<4x1xf32> to vector<4x512xf32>
    %124 = arith.mulf %123, %117 : vector<4x512xf32>
    %125 = arith.addf %107, %124 : vector<4x512xf32>
    %126 = vector.extract_strided_slice %2 {offsets = [0, 24], sizes = [4, 1], strides = [1, 1]} : vector<4x27xf32> to vector<4x1xf32>
    %127 = vector.broadcast %126 : vector<4x1xf32> to vector<4x512xf32>
    %128 = arith.mulf %127, %117 : vector<4x512xf32>
    %129 = arith.addf %111, %128 : vector<4x512xf32>
    %c496_i32 = arith.constant 496 : i32
    %130 = tpu.dynamic_rotate %1 by %c496_i32 dim 1 : vector<4x512xf32>, i32 -> vector<4x512xf32>
    %cst_13 = arith.constant 0.000000e+00 : f32
    %131 = vector.shape_cast %11 : vector<1x512xi1> to vector<1x512xi1>
    %132 = vector.broadcast %131 : vector<1x512xi1> to vector<4x512xi1>
    %133 = vector.broadcast %cst_13 : f32 to vector<4x512xf32>
    %134 = arith.select %132, %130, %133 : vector<4x512xi1>, vector<4x512xf32>
    %135 = vector.extract_strided_slice %2 {offsets = [0, 7], sizes = [4, 1], strides = [1, 1]} : vector<4x27xf32> to vector<4x1xf32>
    %136 = vector.broadcast %135 : vector<4x1xf32> to vector<4x512xf32>
    %137 = arith.mulf %136, %134 : vector<4x512xf32>
    %138 = arith.addf %121, %137 : vector<4x512xf32>
    %139 = vector.extract_strided_slice %2 {offsets = [0, 16], sizes = [4, 1], strides = [1, 1]} : vector<4x27xf32> to vector<4x1xf32>
    %140 = vector.broadcast %139 : vector<4x1xf32> to vector<4x512xf32>
    %141 = arith.mulf %140, %134 : vector<4x512xf32>
    %142 = arith.addf %125, %141 : vector<4x512xf32>
    %143 = vector.extract_strided_slice %2 {offsets = [0, 25], sizes = [4, 1], strides = [1, 1]} : vector<4x27xf32> to vector<4x1xf32>
    %144 = vector.broadcast %143 : vector<4x1xf32> to vector<4x512xf32>
    %145 = arith.mulf %144, %134 : vector<4x512xf32>
    %146 = arith.addf %129, %145 : vector<4x512xf32>
    %c495_i32 = arith.constant 495 : i32
    %147 = tpu.dynamic_rotate %1 by %c495_i32 dim 1 : vector<4x512xf32>, i32 -> vector<4x512xf32>
    %148 = arith.andi %11, %15 : vector<1x512xi1>
    %cst_14 = arith.constant 0.000000e+00 : f32
    %149 = vector.shape_cast %148 : vector<1x512xi1> to vector<1x512xi1>
    %150 = vector.broadcast %149 : vector<1x512xi1> to vector<4x512xi1>
    %151 = vector.broadcast %cst_14 : f32 to vector<4x512xf32>
    %152 = arith.select %150, %147, %151 : vector<4x512xi1>, vector<4x512xf32>
    %153 = vector.extract_strided_slice %2 {offsets = [0, 8], sizes = [4, 1], strides = [1, 1]} : vector<4x27xf32> to vector<4x1xf32>
    %154 = vector.broadcast %153 : vector<4x1xf32> to vector<4x512xf32>
    %155 = arith.mulf %154, %152 : vector<4x512xf32>
    %156 = arith.addf %138, %155 : vector<4x512xf32>
    %157 = vector.extract_strided_slice %2 {offsets = [0, 17], sizes = [4, 1], strides = [1, 1]} : vector<4x27xf32> to vector<4x1xf32>
    %158 = vector.broadcast %157 : vector<4x1xf32> to vector<4x512xf32>
    %159 = arith.mulf %158, %152 : vector<4x512xf32>
    %160 = arith.addf %142, %159 : vector<4x512xf32>
    %161 = vector.extract_strided_slice %2 {offsets = [0, 26], sizes = [4, 1], strides = [1, 1]} : vector<4x27xf32> to vector<4x1xf32>
    %162 = vector.broadcast %161 : vector<4x1xf32> to vector<4x512xf32>
    %163 = arith.mulf %162, %152 : vector<4x512xf32>
    %164 = arith.addf %146, %163 : vector<4x512xf32>
    %cst_15 = arith.constant dense<0.000000e+00> : vector<512xf32>
    %165 = vector.multi_reduction <add>, %156, %cst_15 [0] : vector<4x512xf32> to vector<512xf32>
    %166 = vector.shape_cast %165 : vector<512xf32> to vector<1x512xf32>
    %c0_16 = arith.constant 0 : index
    %167 = memref.load %arg3[%c0_16] : memref<3xf32, #tpu.memory_space<smem>>
    %168 = vector.broadcast %167 : f32 to vector<1x512xf32>
    %169 = arith.addf %166, %168 : vector<1x512xf32>
    %cst_17 = arith.constant dense<0.000000e+00> : vector<512xf32>
    %170 = vector.multi_reduction <add>, %160, %cst_17 [0] : vector<4x512xf32> to vector<512xf32>
    %171 = vector.shape_cast %170 : vector<512xf32> to vector<1x512xf32>
    %c1 = arith.constant 1 : index
    %172 = memref.load %arg3[%c1] : memref<3xf32, #tpu.memory_space<smem>>
    %173 = vector.broadcast %172 : f32 to vector<1x512xf32>
    %174 = arith.addf %171, %173 : vector<1x512xf32>
    %cst_18 = arith.constant dense<0.000000e+00> : vector<512xf32>
    %175 = vector.multi_reduction <add>, %164, %cst_18 [0] : vector<4x512xf32> to vector<512xf32>
    %176 = vector.shape_cast %175 : vector<512xf32> to vector<1x512xf32>
    %c2 = arith.constant 2 : index
    %177 = memref.load %arg3[%c2] : memref<3xf32, #tpu.memory_space<smem>>
    %178 = vector.broadcast %177 : f32 to vector<1x512xf32>
    %179 = arith.addf %176, %178 : vector<1x512xf32>
    %180 = arith.maximumf %169, %174 : vector<1x512xf32>
    %181 = arith.maximumf %180, %179 : vector<1x512xf32>
    %182 = arith.subf %169, %181 : vector<1x512xf32>
    %183 = math.exp %182 : vector<1x512xf32>
    %184 = arith.subf %174, %181 : vector<1x512xf32>
    %185 = math.exp %184 : vector<1x512xf32>
    %186 = arith.subf %179, %181 : vector<1x512xf32>
    %187 = math.exp %186 : vector<1x512xf32>
    %188 = arith.addf %183, %185 : vector<1x512xf32>
    %189 = arith.addf %188, %187 : vector<1x512xf32>
    %cst_19 = arith.constant 1.000000e+00 : f32
    %190 = vector.broadcast %cst_19 : f32 to vector<1x512xf32>
    %191 = arith.divf %190, %189 : vector<1x512xf32>
    %192 = arith.mulf %183, %191 : vector<1x512xf32>
    %c0_20 = arith.constant 0 : index
    %c0_21 = arith.constant 0 : index
    %c0_22 = arith.constant 0 : index
    %193 = vector.load %arg4[%c0_20, %c0_21, %c0_22] : memref<1x3x512xf32, #tpu.memory_space<vmem>>, vector<1x1x512xf32>
    %194 = vector.shape_cast %193 : vector<1x1x512xf32> to vector<1x512xf32>
    %195 = vector.shape_cast %192 : vector<1x512xf32> to vector<1x1x512xf32>
    tpu.vector_store %arg4[%c0_20, %c0_21, %c0_22], %195 {strides = array<i32>} : memref<1x3x512xf32, #tpu.memory_space<vmem>>, vector<1x1x512xf32>,
    %196 = arith.mulf %185, %191 : vector<1x512xf32>
    %c0_23 = arith.constant 0 : index
    %c1_24 = arith.constant 1 : index
    %c0_25 = arith.constant 0 : index
    %197 = vector.load %arg4[%c0_23, %c1_24, %c0_25] : memref<1x3x512xf32, #tpu.memory_space<vmem>>, vector<1x1x512xf32>
    %198 = vector.shape_cast %197 : vector<1x1x512xf32> to vector<1x512xf32>
    %199 = vector.shape_cast %196 : vector<1x512xf32> to vector<1x1x512xf32>
    tpu.vector_store %arg4[%c0_23, %c1_24, %c0_25], %199 {strides = array<i32>} : memref<1x3x512xf32, #tpu.memory_space<vmem>>, vector<1x1x512xf32>,
    %200 = arith.mulf %187, %191 : vector<1x512xf32>
    %c0_26 = arith.constant 0 : index
    %c2_27 = arith.constant 2 : index
    %c0_28 = arith.constant 0 : index
    %201 = vector.load %arg4[%c0_26, %c2_27, %c0_28] : memref<1x3x512xf32, #tpu.memory_space<vmem>>, vector<1x1x512xf32>
    %202 = vector.shape_cast %201 : vector<1x1x512xf32> to vector<1x512xf32>
    %203 = vector.shape_cast %200 : vector<1x512xf32> to vector<1x1x512xf32>
    tpu.vector_store %arg4[%c0_26, %c2_27, %c0_28], %203 {strides = array<i32>} : memref<1x3x512xf32, #tpu.memory_space<vmem>>, vector<1x1x512xf32>,
    return
  }
  func.func @transform_0(%arg0: i32) -> (i32, i32, i32) {
    %c0_i32 = arith.constant 0 : i32
    %c0_i32_0 = arith.constant 0 : i32
    %c0_i32_1 = arith.constant 0 : i32
    return %arg0, %c0_i32, %c0_i32_0 : i32, i32, i32
  }
  func.func @transform_1(%arg0: i32) -> (i32, i32) {
    %c0_i32 = arith.constant 0 : i32
    %c0_i32_0 = arith.constant 0 : i32
    %c0_i32_1 = arith.constant 0 : i32
    return %c0_i32, %c0_i32_0 : i32, i32
  }
  func.func @transform_2(%arg0: i32) -> i32 {
    %c0_i32 = arith.constant 0 : i32
    %c0_i32_0 = arith.constant 0 : i32
    return %c0_i32 : i32
  }
  func.func @transform_3(%arg0: i32) -> (i32, i32, i32) {
    %c0_i32 = arith.constant 0 : i32
    %c0_i32_0 = arith.constant 0 : i32
    %c0_i32_1 = arith.constant 0 : i32
    return %arg0, %c0_i32, %c0_i32_0 : i32, i32, i32
  }
}

</mosaic_0001>

<bundles_post_ra>
// kernel: tpu_custom_call.1
= control target key start
LH: loop header
LB: loop body
LE: loop exit
PB: predicated region body
PF: predicated region fallthrough
CT: control target
= control target key end

     0   :  { %8 = vsyncpa [#allocation3], 0  ;;  %s1666_s0 = inlined_call_operand.hbm [shape: f32[1,4,512], index: 0, kind: input, shape index: {}]   ;;  %s1667_s1 = inlined_call_operand.hbm [shape: f32[4,27], index: 1, kind: input, shape index: {}]   ;;  %s1668_s2 = inlined_call_operand.vmem [shape: f32[3], index: 2, kind: input, shape index: {}]   ;;  %s1669_s3 = inlined_call_operand.vmem [shape: f32[1,3,512], index: 3, kind: output, shape index: {}]  }
   0x1   :  { %9 = vsyncpa [#allocation6], 0 }
   0x2   :  { %10 = vsyncpa [#allocation4], 0  ;;  %s1063_s12 = smov [#allocation2]   ;;  %s1064_s14 = smov [#allocation5]  }
   0x3   :  { %s17_s13 = sshll.u32 %s1063_s12, 4  ;;  %s27_s15 = sshll.u32 %s1064_s14, 4  ;;  %s18_s13 = int_to_ptr.vmem [resolvable:$true] %s17_s13  ;;  %s28_s15 = int_to_ptr.vmem [resolvable:$true] %s27_s15 }
   0x4   :  { %s1001_s18 = scalar_lea.hbm %s1666_s0, 256 }
   0x5   :  { %p1002_p0 = scmp.ne.s32.totalorder %s1666_s0, %s1001_s18  ;;  %p1005_p1 = scmp.lt.u32.totalorder %s1001_s18, %s1666_s0 }
   0x7   :  { %p1007_p2 = pnand %p1005_p1, %p1002_p0 }
   0x9   :  { %1010 = shalt.err (!%p1007_p2)
}
   0xa   :  { %s1011_s23 = scalar_lea.vmem %s18_s13, 256  ;;  %p1016_p4 = scmp.lt.s32.totalorder %s18_s13, %s18_s13 }
   0xb   :  { %p1012_p3 = scmp.ne.s32.totalorder %s18_s13, %s1011_s23  ;;  %p1017_p5 = scmp.lt.s32.totalorder %s1011_s23, %s1011_s23 }
   0xd   :  { %p1018_p6 = por %p1017_p5, %p1016_p4 }
   0xf   :  { %p1019_p7 = pnand %p1018_p6, %p1012_p3 }
  0x11   :  { %1022 = shalt.err (!%p1019_p7)
}
  0x12   :  { %20 = dma.hbm_to_vmem [thread:$0]  %s1666_s0, 256, %s18_s13, [#allocation3]  }
  0x13   :  { %s1023_s28 = scalar_lea.hbm %s1667_s1, 64 }
  0x14   :  { %p1024_p8 = scmp.ne.s32.totalorder %s1667_s1, %s1023_s28  ;;  %p1027_p9 = scmp.lt.u32.totalorder %s1023_s28, %s1667_s1 }
  0x16   :  { %p1029_p10 = pnand %p1027_p9, %p1024_p8 }
  0x18   :  { %1032 = shalt.err (!%p1029_p10)
}
  0x19   :  { %s1033_s6 = scalar_lea.vmem %s28_s15, 64  ;;  %p1038_p12 = scmp.lt.s32.totalorder %s28_s15, %s28_s15 }
  0x1a   :  { %p1034_p11 = scmp.ne.s32.totalorder %s28_s15, %s1033_s6  ;;  %p1039_p13 = scmp.lt.s32.totalorder %s1033_s6, %s1033_s6 }
  0x1c   :  { %p1040_p0 = por %p1039_p13, %p1038_p12 }
  0x1e   :  { %p1041_p1 = pnand %p1040_p0, %p1034_p11 }
  0x20   :  { %1044 = shalt.err (!%p1041_p1)
}
  0x21   :  { %30 = dma.hbm_to_vmem [thread:$0]  %s1667_s1, 64, %s28_s15, [#allocation6]  }
  0x22   :  { %s37_s10 = sshll.u32 %s1668_s2, 4  ;;  %s38_s10 = int_to_ptr.vmem [resolvable:$true] %s37_s10 }
  0x23   :  { %s1045_s11 = scalar_lea.vmem %s38_s10, 16  ;;  %p1050_p3 = scmp.lt.s32.totalorder %s38_s10, %s38_s10 }
  0x24   :  { %p1046_p2 = scmp.ne.s32.totalorder %s38_s10, %s1045_s11  ;;  %p1051_p4 = scmp.lt.s32.totalorder %s1045_s11, %s1045_s11 }
  0x26   :  { %p1052_p5 = por %p1051_p4, %p1050_p3 }
  0x28   :  { %p1053_p6 = pnand %p1052_p5, %p1046_p2 }
  0x2a   :  { %1056 = shalt.err (!%p1053_p6)
}
  0x2b   :  { %s1065_s12 = smov [#allocation7]  }
  0x2c   :  { %40 = dma.vmem_to_smem %s38_s10, 16, %s1065_s12, [#allocation4]  }
  0x2d   :  { %1057 = dma.done.wait [#allocation3], 256  }
  0x2e   :  { %1058 = vsyncadd [#allocation3], 4294967040 }
  0x2f   :  { %1059 = dma.done.wait [#allocation6], 64  }
  0x30   :  { %1060 = vsyncadd [#allocation6], 4294967232 }
  0x31   :  { %1061 = dma.done.wait [#allocation4], 16  }
  0x32   :  { %1062 = vsyncadd [#allocation4], 4294967280 }
  0x33   :  { %50 = sfence }
  0x34   :  { %v1149_v0 = vld [vmem:[#allocation2 + $0x8] sm:$0xff]  ;;  %v1151_v1 = vld [vmem:[#allocation2] sm:$0xff]  ;;  %s1066_s1 = smov 17   ;;  %v1067_v4 = vmov 9   ;;  %v1068_v5 = vmov 0   ;;  %v1069_v7 = vmov 18   ;;  %v54_v31 = vlaneseq }
  0x35   :  { %93 = vrot.lane.b32.xlu1 %v1149_v0, %s1066_s1  ;;  %89 = vrot.lane.b32.xlu0 %v1151_v1, %s1066_s1  ;;  %v1157_v2 = vcombine.high %v1149_v0, %v1149_v0  ;;  %v1161_v3 = vcombine.high %v1151_v1, %v1151_v1  ;;  %v1165_v6 = vld [vmem:[#allocation5] sm:$0xf]  ;;  %s1070_s2 = smov 16   ;;  %v1071_v8 = vmov 1   ;;  %v1072_v9 = vmov 10   ;;  %s1079_s13 = smov 15  }
  0x36   :  { %940 = vset.pattern.permute.xlu1 %v1067_v4  ;;  %939 = vset.pattern.permute.xlu0 %v1068_v5  ;;  %v1073_v10 = vmov 2   ;;  %v1074_v11 = vmov 19   ;;  %v1075_v12 = vmov 3   ;;  %v1076_v13 = vmov 11   ;;  %s1083_s14 = smov 1   ;;  %s1088_s15 = smov 127  }
  0x37   :  { %v1077_v14 = vmov 4   ;;  %v1078_v15 = vmov 20   ;;  %v1080_v16 = vmov 5   ;;  %v1081_v17 = vmov 12   ;;  %s1092_s16 = smov 113   ;;  %s1095_s17 = smov 112  }
  0x38   :  { %v1082_v18 = vmov 21   ;;  %v1084_v19 = vmov 6   ;;  %v1085_v20 = vmov 13   ;;  %v1086_v21 = vmov 22   ;;  %s1097_s18 = smov 111   ;;  %s647_s19 = sld [smem:[#allocation7]] }
  0x39   :  { %95 = vrot.lane.b32.xlu1 %v1157_v2, %s1066_s1  ;;  %91 = vrot.lane.b32.xlu0 %v1161_v3, %s1066_s1  ;;  %v1087_v22 = vmov 7   ;;  %v1089_v23 = vmov 8   ;;  %v1090_v24 = vmov 14   ;;  %v1091_v25 = vmov 23   ;;  %s896_s20 = sld [smem:[#allocation7 + $0x1]]  ;;  %s897_s21 = sld [smem:[#allocation7 + $0x2]] }
  0x3a   :  { %v1093_v26 = vmov 26   ;;  %v1094_v27 = vmov 15   ;;  %v1096_v28 = vmov 24   ;;  %v1098_v29 = vmov 16  }
  0x3b   :  { %v1099_v30 = vmov 25   ;;  %v1225_v34 = vand.u32 127, %v54_v31  ;;  %v1100_v35 = vmov 17  }
  0x3d   :  { %128 = vperm.xlu1 %940, %v1165_v6   ;;  %120 = vperm.xlu0 %939, %v1165_v6   ;;  %vm97_vm0 = vcmp.lt.s32.totalorder %v1225_v34, 17  ;;  %v1232_v42 = vadd.s32 256, %v1225_v34  ;;  %v1235_v43 = vadd.s32 128, %v1225_v34  ;;  %v1238_v44 = vadd.s32 384, %v1225_v34 }
  0x3e   :  { %v59_v45 = vand.u32 255, %v1225_v34  ;;  %v63_v46 = vand.u32 15, %v1225_v34  ;;  %vm151_vm9 = vcmp.lt.s32.totalorder %v1225_v34, 16  ;;  %vm212_vm11 = vcmp.lt.s32.totalorder %v1225_v34, 15 }
  0x3f   :  { %v61_v47 = vand.u32 255, %v1232_v42  ;;  %v65_v48 = vand.u32 15, %v1232_v42  ;;  %v64_v49 = vand.u32 15, %v1235_v43  ;;  %v66_v50 = vand.u32 15, %v1238_v44 }
  0x40   :  { %vm1248_vm1 = vcmp.ge.s32.totalorder %v59_v45, 16  ;;  %vm1254_vm2 = vcmp.ge.s32.totalorder %v63_v46, 1  ;;  %vm1322_vm10 = vcmp.lt.s32.totalorder %v63_v46, 15 }
  0x41   :  { %941 = vset.pattern.permute.xlu1 %v1069_v7  ;;  %143 = vrot.lane.b32.xlu0 %v1151_v1, %s1070_s2  ;;  %vm1259_vm3 = vcmp.ge.s32.totalorder %v61_v47, 16  ;;  %vm1265_vm4 = vcmp.ge.s32.totalorder %v65_v48, 1  ;;  %vm1271_vm5 = vcmp.ge.s32.totalorder %v64_v49, 1  ;;  %vm102_vm6 = vmand %vm1248_vm1, %vm1254_vm2  ;;  %vm1281_vm7 = vcmp.ge.s32.totalorder %v66_v50, 1 }
  0x42   :  { %136 = vperm.xlu1 %941, %v1165_v6   ;;  %942 = vset.pattern.permute.xlu0 %v1071_v8  ;;  %vm104_vm8 = vmand %vm1259_vm3, %vm1265_vm4  ;;  %vm1329_vm12 = vcmp.lt.s32.totalorder %v64_v49, 15  ;;  %vm1343_vm14 = vcmp.lt.s32.totalorder %v65_v48, 15  ;;  %vm1353_vm15 = vcmp.lt.s32.totalorder %v66_v50, 15 }
  0x43   :  { %vm217_vm13 = vmand %vm1248_vm1, %vm1322_vm10 }
  0x45   :  { %147 = vrot.lane.b32.xlu0 %v1149_v0, %s1070_s2 }
  0x46   :  { %145 = vrot.lane.b32.xlu1 %v1161_v3, %s1070_s2 }
  0x47   :  { %943 = vset.pattern.permute.xlu1 %v1072_v9 }
  0x49   :  { %169 = vperm.xlu0 %942, %v1165_v6  }
  0x4a   :  { %149 = vrot.lane.b32.xlu1 %v1157_v2, %s1070_s2 }
  0x4d   :  { %945 = vset.pattern.permute.xlu0 %v1073_v10 }
  0x4e   :  { %181 = vperm.xlu1 %943, %v1165_v6   ;;  %234 = vperm.xlu0 %945, %v1165_v6  }
  0x52   :  { %944 = vset.pattern.permute.xlu1 %v1074_v11  ;;  %948 = vset.pattern.permute.xlu0 %v1075_v12 }
  0x53   :  { %193 = vperm.xlu1 %944, %v1165_v6   ;;  %295 = vperm.xlu0 %948, %v1165_v6  }
  0x57   :  { %946 = vset.pattern.permute.xlu1 %v1076_v13  ;;  %951 = vset.pattern.permute.xlu0 %v1077_v14 }
  0x58   :  { %246 = vperm.xlu1 %946, %v1165_v6   ;;  %331 = vperm.xlu0 %951, %v1165_v6  }
  0x5c   :  { %947 = vset.pattern.permute.xlu1 %v1078_v15  ;;  %206 = vrot.lane.b32.xlu0 %v1161_v3, %s1079_s13 }
  0x5d   :  { %258 = vperm.xlu1 %947, %v1165_v6   ;;  %954 = vset.pattern.permute.xlu0 %v1080_v16 }
  0x60   :  { %210 = vrot.lane.b32.xlu0 %v1157_v2, %s1079_s13 }
  0x61   :  { %949 = vset.pattern.permute.xlu1 %v1081_v17 }
  0x62   :  { %307 = vperm.xlu1 %949, %v1165_v6  }
  0x64   :  { %392 = vperm.xlu0 %954, %v1165_v6  }
  0x66   :  { %950 = vset.pattern.permute.xlu1 %v1082_v18 }
  0x67   :  { %319 = vperm.xlu1 %950, %v1165_v6  }
  0x68   :  { %271 = vrot.lane.b32.xlu0 %v1161_v3, %s1083_s14 }
  0x69   :  { %957 = vset.pattern.permute.xlu0 %v1084_v19 }
  0x6b   :  { %952 = vset.pattern.permute.xlu1 %v1085_v20 }
  0x6c   :  { %343 = vperm.xlu1 %952, %v1165_v6   ;;  %275 = vrot.lane.b32.xlu0 %v1157_v2, %s1083_s14 }
  0x70   :  { %204 = vrot.lane.b32.xlu1 %v1151_v1, %s1079_s13  ;;  %457 = vperm.xlu0 %957, %v1165_v6  }
  0x71   :  { %953 = vset.pattern.permute.xlu1 %v1086_v21 }
  0x74   :  { %208 = vrot.lane.b32.xlu1 %v1149_v0, %s1079_s13  ;;  %960 = vset.pattern.permute.xlu0 %v1087_v22 }
  0x75   :  { %518 = vperm.xlu0 %960, %v1165_v6  }
  0x78   :  { %355 = vperm.xlu1 %953, %v1165_v6  }
  0x79   :  { %368 = vrot.lane.b32.xlu0 %v1161_v3, %s1088_s15 }
  0x7a   :  { %963 = vset.pattern.permute.xlu0 %v1089_v23 }
  0x7c   :  { %955 = vset.pattern.permute.xlu1 %v1090_v24 }
  0x7d   :  { %404 = vperm.xlu1 %955, %v1165_v6   ;;  %372 = vrot.lane.b32.xlu0 %v1157_v2, %s1088_s15 }
  0x81   :  { %269 = vrot.lane.b32.xlu1 %v1151_v1, %s1083_s14  ;;  %583 = vperm.xlu0 %963, %v1165_v6  }
  0x82   :  { %956 = vset.pattern.permute.xlu1 %v1091_v25 }
  0x85   :  { %273 = vrot.lane.b32.xlu1 %v1149_v0, %s1083_s14  ;;  %429 = vrot.lane.b32.xlu0 %v1161_v3, %s1092_s16 }
  0x86   :  { %966 = vset.pattern.permute.xlu0 %v1093_v26 }
  0x89   :  { %416 = vperm.xlu1 %956, %v1165_v6   ;;  %433 = vrot.lane.b32.xlu0 %v1157_v2, %s1092_s16 }
  0x8d   :  { %958 = vset.pattern.permute.xlu1 %v1094_v27  ;;  %492 = vrot.lane.b32.xlu0 %v1151_v1, %s1095_s17 }
  0x8e   :  { %469 = vperm.xlu1 %958, %v1165_v6  }
  0x91   :  { %496 = vrot.lane.b32.xlu0 %v1149_v0, %s1095_s17 }
  0x92   :  { %959 = vset.pattern.permute.xlu1 %v1096_v28 }
  0x93   :  { %481 = vperm.xlu1 %959, %v1165_v6  }
  0x95   :  { %553 = vrot.lane.b32.xlu0 %v1151_v1, %s1097_s18 }
  0x97   :  { %961 = vset.pattern.permute.xlu1 %v1098_v29 }
  0x98   :  { %530 = vperm.xlu1 %961, %v1165_v6  }
  0x99   :  { %557 = vrot.lane.b32.xlu0 %v1149_v0, %s1097_s18 }
  0x9c   :  { %366 = vrot.lane.b32.xlu1 %v1151_v1, %s1088_s15 }
  0x9d   :  { %962 = vset.pattern.permute.xlu1 %v1099_v30 }
  0xa0   :  { %370 = vrot.lane.b32.xlu1 %v1149_v0, %s1088_s15 }
  0xa4   :  { %542 = vperm.xlu1 %962, %v1165_v6  }
  0xa7   :  { %v94_v32 = vpop.permute.xlu1 %93  ;;  %v90_v33 = vpop.permute.xlu0 %89 }
  0xa8   :  { %964 = vset.pattern.permute.xlu1 %v1100_v35 }
  0xa9   :  { %595 = vperm.xlu1 %964, %v1165_v6  }
  0xab   :  { %v96_v36 = vpop.permute.xlu1 %95  ;;  %v92_v37 = vpop.permute.xlu0 %91 }
  0xac   :  { %v98_v38 = vsel %vm97_vm0, %v94_v32, %v96_v36  ;;  %v101_v39 = vsel %vm97_vm0, %v96_v36, %v90_v33  ;;  %v99_v40 = vsel %vm97_vm0, %v92_v37, %v94_v32  ;;  %v100_v41 = vsel %vm97_vm0, %v90_v33, %v92_v37  ;;  %vm219_vm0 = vmand %vm1259_vm3, %vm1343_vm14 }
  0xad   :  { %427 = vrot.lane.b32.xlu1 %v1151_v1, %s1092_s16  ;;  %v115_v57 = vsel %vm1271_vm5, %v100_v41, 0.0  ;;  %v114_v58 = vsel %vm102_vm6, %v101_v39, 0.0  ;;  %v117_v59 = vsel %vm1281_vm7, %v98_v38, 0.0  ;;  %v116_v60 = vsel %vm104_vm8, %v99_v40, 0.0 }
  0xae   :  { %965 = vset.pattern.permute.xlu1 %v1093_v26  ;;  %vm435_vm6 = vcmp.lt.s32.totalorder %v1225_v34, 113 }
  0xb1   :  { %431 = vrot.lane.b32.xlu1 %v1149_v0, %s1092_s16 }
  0xb5   :  { %607 = vperm.xlu1 %965, %v1165_v6  }
  0xb9   :  { %494 = vrot.lane.b32.xlu1 %v1161_v3, %s1095_s17 }
  0xbc   :  { %v129_v61 = vpop.permute.xlu1 %128  ;;  %v121_v62 = vpop.permute.xlu0 %120 }
  0xbd   :  { %v131_v63 = vmul.f32 %v129_v61, %v114_v58  ;;  %v132_v4 = vmul.f32 %v129_v61, %v115_v57  ;;  %v133_v5 = vmul.f32 %v129_v61, %v116_v60  ;;  %v134_v6 = vmul.f32 %v129_v61, %v117_v59  ;;  %498 = vrot.lane.b32.xlu1 %v1157_v2, %s1095_s17 }
  0xbe   :  { %v123_v7 = vmul.f32 %v121_v62, %v114_v58  ;;  %v124_v8 = vmul.f32 %v121_v62, %v115_v57  ;;  %v125_v9 = vmul.f32 %v121_v62, %v116_v60  ;;  %v126_v10 = vmul.f32 %v121_v62, %v117_v59 }
  0xc0   :  { %v144_v11 = vpop.permute.xlu0 %143 }
  0xc1   :  { %v137_v12 = vpop.permute.xlu1 %136  ;;  %555 = vrot.lane.b32.xlu1 %v1161_v3, %s1097_s18 }
  0xc2   :  { %v139_v13 = vmul.f32 %v137_v12, %v114_v58  ;;  %v140_v14 = vmul.f32 %v137_v12, %v115_v57  ;;  %v141_v15 = vmul.f32 %v137_v12, %v116_v60  ;;  %v142_v16 = vmul.f32 %v137_v12, %v117_v59 }
  0xc4   :  { %v148_v17 = vpop.permute.xlu0 %147 }
  0xc5   :  { %v146_v18 = vpop.permute.xlu1 %145  ;;  %559 = vrot.lane.b32.xlu1 %v1157_v2, %s1097_s18 }
  0xc6   :  { %v153_v19 = vsel %vm151_vm9, %v146_v18, %v148_v17  ;;  %v154_v20 = vsel %vm151_vm9, %v144_v11, %v146_v18 }
  0xc7   :  { %v166_v21 = vsel %vm1259_vm3, %v153_v19, 0.0  ;;  %vm374_vm3 = vcmp.lt.s32.totalorder %v1225_v34, 127 }
  0xc8   :  { %v170_v22 = vpop.permute.xlu0 %169 }
  0xc9   :  { %v173_v23 = vmul.f32 %v170_v22, %v154_v20  ;;  %v174_v24 = vmul.f32 %v170_v22, %v166_v21  ;;  %v150_v25 = vpop.permute.xlu1 %149 }
  0xca   :  { %v152_v26 = vsel %vm151_vm9, %v148_v17, %v150_v25  ;;  %v155_v27 = vsel %vm151_vm9, %v150_v25, %v144_v11 }
  0xcb   :  { %v177_v28 = vadd.f32 %v173_v23, %v124_v8  ;;  %v1304_v29 = vadd.f32 %v174_v24, %v125_v9  ;;  %v164_v30 = vsel %vm1248_vm1, %v155_v27, 0.0  ;;  %v175_v32 = vmul.f32 %v170_v22, %v152_v26 }
  0xcc   :  { %v172_v33 = vmul.f32 %v170_v22, %v164_v30  ;;  %vm277_vm1 = vcmp.lt.s32.totalorder %v1225_v34, 1 }
  0xcd   :  { %v1308_v35 = vadd.f32 %v175_v32, %v126_v10  ;;  %v182_v36 = vpop.permute.xlu1 %181  ;;  %v235_v17 = vpop.permute.xlu0 %234 }
  0xce   :  { %v176_v37 = vadd.f32 %v172_v33, %v123_v7  ;;  %v184_v38 = vmul.f32 %v182_v36, %v164_v30  ;;  %v185_v39 = vmul.f32 %v182_v36, %v154_v20  ;;  %v186_v40 = vmul.f32 %v182_v36, %v166_v21 }
  0xcf   :  { %v187_v41 = vmul.f32 %v182_v36, %v152_v26 }
  0xd0   :  { %v188_v45 = vadd.f32 %v184_v38, %v131_v63  ;;  %v189_v47 = vadd.f32 %v185_v39, %v132_v4  ;;  %v190_v57 = vadd.f32 %v186_v40, %v133_v5 }
  0xd1   :  { %v191_v58 = vadd.f32 %v187_v41, %v134_v6 }
  0xd2   :  { %v194_v59 = vpop.permute.xlu1 %193  ;;  %v1310_v7 = vpop.permute.xlu0 %295 }
  0xd3   :  { %v196_v60 = vmul.f32 %v194_v59, %v164_v30  ;;  %v197_v61 = vmul.f32 %v194_v59, %v154_v20  ;;  %v198_v62 = vmul.f32 %v194_v59, %v166_v21  ;;  %v199_v8 = vmul.f32 %v194_v59, %v152_v26 }
  0xd5   :  { %v200_v9 = vadd.f32 %v196_v60, %v139_v13  ;;  %v201_v11 = vadd.f32 %v197_v61, %v140_v14  ;;  %v202_v12 = vadd.f32 %v198_v62, %v141_v15  ;;  %v203_v10 = vadd.f32 %v199_v8, %v142_v16 }
  0xd7   :  { %v247_v18 = vpop.permute.xlu1 %246  ;;  %v1314_v63 = vpop.permute.xlu0 %331 }
  0xdb   :  { %v207_v5 = vpop.permute.xlu0 %206 }
  0xdc   :  { %v259_v19 = vpop.permute.xlu1 %258 }
  0xdf   :  { %v211_v14 = vpop.permute.xlu0 %210 }
  0xe1   :  { %v1312_v22 = vpop.permute.xlu1 %307 }
  0xe3   :  { %v1349_v27 = vpop.permute.xlu0 %392 }
  0xe6   :  { %v1316_v4 = vpop.permute.xlu1 %319 }
  0xeb   :  { %v1318_v6 = vpop.permute.xlu1 %343 }
  0xef   :  { %v205_v16 = vpop.permute.xlu1 %204 }
  0xf0   :  { %v215_v46 = vsel %vm212_vm11, %v205_v16, %v207_v5  ;;  %v216_v20 = vsel %vm212_vm11, %v211_v14, %v205_v16  ;;  %v272_v16 = vpop.permute.xlu0 %271 }
  0xf1   :  { %v230_v49 = vsel %vm1329_vm12, %v215_v46, 0.0  ;;  %v229_v23 = vsel %vm217_vm13, %v216_v20, 0.0  ;;  %vm500_vm13 = vcmp.lt.s32.totalorder %v1225_v34, 112 }
  0xf2   :  { %v238_v24 = vmul.f32 %v235_v17, %v230_v49  ;;  %v250_v51 = vmul.f32 %v247_v18, %v230_v49  ;;  %v262_v25 = vmul.f32 %v259_v19, %v230_v49  ;;  %v237_v26 = vmul.f32 %v235_v17, %v229_v23 }
  0xf3   :  { %v249_v30 = vmul.f32 %v247_v18, %v229_v23  ;;  %v261_v32 = vmul.f32 %v259_v19, %v229_v23  ;;  %v209_v48 = vpop.permute.xlu1 %208 }
  0xf4   :  { %v1361_v33 = vadd.f32 %v238_v24, %v177_v28  ;;  %v254_v36 = vadd.f32 %v250_v51, %v189_v47  ;;  %v266_v38 = vadd.f32 %v262_v25, %v201_v11  ;;  %v1363_v39 = vadd.f32 %v237_v26, %v176_v37 }
  0xf5   :  { %v253_v40 = vadd.f32 %v249_v30, %v188_v45  ;;  %v265_v41 = vadd.f32 %v261_v32, %v200_v9  ;;  %v213_v50 = vsel %vm212_vm11, %v209_v48, %v211_v14  ;;  %v214_v59 = vsel %vm212_vm11, %v207_v5, %v209_v48 }
  0xf6   :  { %v231_v60 = vsel %vm219_vm0, %v214_v59, 0.0  ;;  %v232_v53 = vsel %vm1353_vm15, %v213_v50, 0.0  ;;  %v346_v51 = vmul.f32 %v1318_v6, %v1151_v1  ;;  %v347_v25 = vmul.f32 %v1318_v6, %v1161_v3 }
  0xf7   :  { %v239_v61 = vmul.f32 %v235_v17, %v231_v60  ;;  %v240_v62 = vmul.f32 %v235_v17, %v232_v53  ;;  %v251_v28 = vmul.f32 %v247_v18, %v231_v60  ;;  %v252_v8 = vmul.f32 %v247_v18, %v232_v53  ;;  %v356_v47 = vpop.permute.xlu1 %355  ;;  %v276_v17 = vpop.permute.xlu0 %275 }
  0xf8   :  { %v263_v11 = vmul.f32 %v259_v19, %v231_v60  ;;  %v264_v37 = vmul.f32 %v259_v19, %v232_v53  ;;  %v348_v53 = vmul.f32 %v1318_v6, %v1149_v0 }
  0xf9   :  { %v1372_v45 = vadd.f32 %v239_v61, %v1304_v29  ;;  %v1375_v9 = vadd.f32 %v240_v62, %v1308_v35  ;;  %v255_v14 = vadd.f32 %v251_v28, %v190_v57  ;;  %v256_v5 = vadd.f32 %v252_v8, %v191_v58 }
  0xfa   :  { %v267_v46 = vadd.f32 %v263_v11, %v202_v12  ;;  %v268_v20 = vadd.f32 %v264_v37, %v203_v10  ;;  %v358_v61 = vmul.f32 %v356_v47, %v1151_v1 }
  0xfb   :  { %v1408_v60 = vpop.permute.xlu0 %457 }
  0xfc   :  { %v1377_v49 = vpop.permute.xlu1 %404 }
 0x100   :  { %v270_v18 = vpop.permute.xlu1 %269 }
 0x101   :  { %v280_v19 = vsel %vm277_vm1, %v270_v18, %v272_v16  ;;  %v281_v29 = vsel %vm277_vm1, %v276_v17, %v270_v18  ;;  %v360_v18 = vmul.f32 %v356_v47, %v1149_v0 }
 0x102   :  { %v1386_v35 = vsel %vm1271_vm5, %v280_v19, 0.0  ;;  %v1390_v57 = vsel %vm1254_vm2, %v281_v29, 0.0  ;;  %v361_v19 = vmul.f32 %v356_v47, %v1157_v2 }
 0x103   :  { %v311_v58 = vmul.f32 %v1312_v22, %v1386_v35  ;;  %v323_v12 = vmul.f32 %v1316_v4, %v1386_v35  ;;  %v310_v10 = vmul.f32 %v1312_v22, %v1390_v57  ;;  %v322_v23 = vmul.f32 %v1316_v4, %v1390_v57 }
 0x104   :  { %v274_v24 = vpop.permute.xlu1 %273 }
 0x105   :  { %v315_v26 = vadd.f32 %v311_v58, %v254_v36  ;;  %v327_v30 = vadd.f32 %v323_v12, %v266_v38  ;;  %v314_v32 = vadd.f32 %v310_v10, %v253_v40  ;;  %v326_v48 = vadd.f32 %v322_v23, %v265_v41 }
 0x106   :  { %v278_v50 = vsel %vm277_vm1, %v274_v24, %v276_v17  ;;  %v279_v59 = vsel %vm277_vm1, %v272_v16, %v274_v24  ;;  %v349_v38 = vmul.f32 %v1318_v6, %v1157_v2  ;;  %v359_v40 = vmul.f32 %v356_v47, %v1161_v3 }
 0x107   :  { %v292_v62 = vsel %vm1265_vm4, %v279_v59, 0.0  ;;  %v293_v36 = vsel %vm1281_vm7, %v278_v50, 0.0  ;;  %v350_v16 = vadd.f32 %v346_v51, %v314_v32  ;;  %v1426_v17 = vadd.f32 %v358_v61, %v326_v48 }
 0x108   :  { %v312_v41 = vmul.f32 %v1312_v22, %v292_v62  ;;  %v313_v28 = vmul.f32 %v1312_v22, %v293_v36  ;;  %v1422_v8 = vpop.permute.xlu1 %416  ;;  %v324_v11 = vmul.f32 %v1316_v4, %v292_v62  ;;  %v325_v37 = vmul.f32 %v1316_v4, %v293_v36  ;;  %v1432_v22 = vpop.permute.xlu0 %518 }
 0x109   :  { %v351_v10 = vadd.f32 %v347_v25, %v315_v26  ;;  %v1430_v23 = vadd.f32 %v359_v40, %v327_v30 }
 0x10a   :  { %v316_v6 = vadd.f32 %v312_v41, %v255_v14  ;;  %v317_v29 = vadd.f32 %v313_v28, %v256_v5  ;;  %v328_v58 = vadd.f32 %v324_v11, %v267_v46  ;;  %v329_v12 = vadd.f32 %v325_v37, %v268_v20 }
 0x10c   :  { %v353_v24 = vadd.f32 %v349_v38, %v317_v29  ;;  %v352_v50 = vadd.f32 %v348_v53, %v316_v6  ;;  %v1436_v4 = vadd.f32 %v361_v19, %v329_v12  ;;  %v1438_v51 = vadd.f32 %v360_v18, %v328_v58  ;;  %v369_v47 = vpop.permute.xlu0 %368 }
 0x10d   :  { %v1434_v59 = vpop.permute.xlu1 %469 }
 0x110   :  { %v373_v5 = vpop.permute.xlu0 %372 }
 0x112   :  { %v1440_v32 = vpop.permute.xlu1 %481 }
 0x114   :  { %v1445_v26 = vpop.permute.xlu0 %583 }
 0x117   :  { %v1442_v14 = vpop.permute.xlu1 %530 }
 0x118   :  { %v430_v19 = vpop.permute.xlu0 %429 }
 0x11b   :  { %v367_v46 = vpop.permute.xlu1 %366 }
 0x11c   :  { %v377_v20 = vsel %vm374_vm3, %v367_v46, %v369_v47  ;;  %v378_v25 = vsel %vm374_vm3, %v373_v5, %v367_v46  ;;  %v300_v46 = vmul.f32 %v1310_v7, %v292_v62 }
 0x11d   :  { %v387_v30 = vsel %vm1322_vm10, %v377_v20, 0.0  ;;  %v390_v48 = vsel %vm1353_vm15, %v378_v25, 0.0  ;;  %v334_v25 = vmul.f32 %v1314_v63, %v1151_v1  ;;  %v336_v1 = vmul.f32 %v1314_v63, %v1149_v0 }
 0x11e   :  { %v407_v53 = vmul.f32 %v1377_v49, %v387_v30  ;;  %v410_v61 = vmul.f32 %v1377_v49, %v390_v48  ;;  %v304_v62 = vadd.f32 %v300_v46, %v1372_v45 }
 0x11f   :  { %v371_v38 = vpop.permute.xlu1 %370 }
 0x120   :  { %v1453_v40 = vadd.f32 %v407_v53, %v350_v16  ;;  %v1455_v41 = vadd.f32 %v410_v61, %v353_v24  ;;  %v375_v28 = vsel %vm374_vm3, %v371_v38, %v373_v5  ;;  %v376_v11 = vsel %vm374_vm3, %v369_v47, %v371_v38 }
 0x121   :  { %v388_v37 = vsel %vm1329_vm12, %v376_v11, 0.0  ;;  %v389_v18 = vsel %vm1343_vm14, %v375_v28, 0.0  ;;  %v298_v24 = vmul.f32 %v1310_v7, %v1390_v57  ;;  %v62_v47 = vand.u32 255, %v1238_v44 }
 0x122   :  { %v408_v6 = vmul.f32 %v1377_v49, %v388_v37  ;;  %v409_v29 = vmul.f32 %v1377_v49, %v389_v18  ;;  %v299_v5 = vmul.f32 %v1310_v7, %v1386_v35  ;;  %v301_v49 = vmul.f32 %v1310_v7, %v293_v36 }
 0x123   :  { %v1463_v58 = vpop.permute.xlu1 %542  ;;  %v302_v57 = vadd.f32 %v298_v24, %v1363_v39  ;;  %vm1483_vm8 = vcmp.lt.s32.totalorder %v62_v47, 240  ;;  %v335_v35 = vmul.f32 %v1314_v63, %v1161_v3  ;;  %v337_v61 = vmul.f32 %v1314_v63, %v1157_v2 }
 0x124   :  { %v1465_v12 = vadd.f32 %v408_v6, %v351_v10  ;;  %v1467_v16 = vadd.f32 %v409_v29, %v352_v50  ;;  %v434_v10 = vpop.permute.xlu0 %433  ;;  %v60_v50 = vand.u32 255, %v1235_v43  ;;  %v303_v7 = vadd.f32 %v299_v5, %v1361_v33  ;;  %vm443_vm11 = vmand %vm1483_vm8, %vm1281_vm7 }
 0x125   :  { %v305_v43 = vadd.f32 %v301_v49, %v1375_v9  ;;  %v395_v3 = vmul.f32 %v1349_v27, %v387_v30  ;;  %v338_v45 = vadd.f32 %v334_v25, %v302_v57  ;;  %v1512_v9 = vstv %s647_s19 }
 0x126   :  { %vm1494_vm9 = vcmp.lt.s32.totalorder %v60_v50, 240  ;;  %v1514_v38 = vstv %s896_s20  ;;  %v1516_v2 = vstv %s897_s21  ;;  %v339_v28 = vadd.f32 %v335_v35, %v303_v7 }
 0x127   :  { %v341_v63 = vadd.f32 %v337_v61, %v305_v43  ;;  %v340_v11 = vadd.f32 %v336_v1, %v304_v62  ;;  %v419_v6 = vmul.f32 %v1422_v8, %v387_v30  ;;  %v398_v29 = vmul.f32 %v1349_v27, %v390_v48  ;;  %vm441_vm7 = vmand %vm1494_vm9, %vm1271_vm5 }
 0x128   :  { %v1476_v20 = vpop.permute.xlu1 %595  ;;  %v1498_v53 = vpop.permute.xlu0 %492  ;;  %v422_v24 = vmul.f32 %v1422_v8, %v390_v48  ;;  %v399_v46 = vadd.f32 %v395_v3, %v338_v45  ;;  %v396_v49 = vmul.f32 %v1349_v27, %v388_v37  ;;  %v397_v50 = vmul.f32 %v1349_v27, %v389_v18  ;;  %vm567_vm5 = vmand %vm1494_vm9, %vm1329_vm12 }
 0x129   :  { %v420_v52 = vmul.f32 %v1422_v8, %v388_v37  ;;  %v421_v30 = vmul.f32 %v1422_v8, %v389_v18  ;;  %v423_v37 = vadd.f32 %v419_v6, %v1426_v17  ;;  %v402_v43 = vadd.f32 %v398_v29, %v341_v63 }
 0x12a   :  { %v400_v1 = vadd.f32 %v396_v49, %v339_v28  ;;  %vm816_vm12 = vcmp.lt.s32.totalorder %v54_v31, 512 }
 0x12b   :  { %v424_v3 = vadd.f32 %v420_v52, %v1430_v23 }
 0x12c   :  { %v428_v36 = vpop.permute.xlu1 %427  ;;  %v497_v57 = vpop.permute.xlu0 %496 }
 0x12d   :  { %v438_v33 = vsel %vm435_vm6, %v428_v36, %v430_v19  ;;  %v439_v0 = vsel %vm435_vm6, %v434_v10, %v428_v36  ;;  %v401_v36 = vadd.f32 %v397_v50, %v340_v11 }
 0x12e   :  { %v452_v56 = vsel %vm1254_vm2, %v438_v33, 0.0  ;;  %v455_v47 = vsel %vm443_vm11, %v439_v0, 0.0  ;;  %v425_v33 = vadd.f32 %v421_v30, %v1438_v51  ;;  %vm561_vm2 = vcmp.lt.s32.totalorder %v1225_v34, 111 }
 0x12f   :  { %v460_v25 = vmul.f32 %v1408_v60, %v452_v56  ;;  %v472_v35 = vmul.f32 %v1434_v59, %v452_v56  ;;  %v484_v7 = vmul.f32 %v1440_v32, %v452_v56  ;;  %v463_v62 = vmul.f32 %v1408_v60, %v455_v47 }
 0x130   :  { %v432_v5 = vpop.permute.xlu1 %431  ;;  %v475_v8 = vmul.f32 %v1434_v59, %v455_v47  ;;  %v487_v61 = vmul.f32 %v1440_v32, %v455_v47  ;;  %v1557_v6 = vpop.permute.xlu0 %553 }
 0x131   :  { %v436_v48 = vsel %vm435_vm6, %v432_v5, %v434_v10  ;;  %v437_v55 = vsel %vm435_vm6, %v430_v19, %v432_v5  ;;  %v426_v19 = vadd.f32 %v422_v24, %v1436_v4  ;;  %v464_v0 = vadd.f32 %v460_v25, %v399_v46 }
 0x132   :  { %v453_v27 = vsel %vm441_vm7, %v437_v55, 0.0  ;;  %v454_v18 = vsel %vm1265_vm4, %v436_v48, 0.0  ;;  %v476_v54 = vadd.f32 %v472_v35, %v1453_v40  ;;  %v488_v45 = vadd.f32 %v484_v7, %v423_v37 }
 0x133   :  { %v461_v17 = vmul.f32 %v1408_v60, %v453_v27  ;;  %v467_v63 = vadd.f32 %v463_v62, %v402_v43  ;;  %v462_v56 = vmul.f32 %v1408_v60, %v454_v18  ;;  %v479_v4 = vadd.f32 %v475_v8, %v1455_v41 }
 0x134   :  { %v1543_v10 = vpop.permute.xlu1 %607  ;;  %v473_v28 = vmul.f32 %v1434_v59, %v453_v27  ;;  %v474_v11 = vmul.f32 %v1434_v59, %v454_v18  ;;  %v485_v23 = vmul.f32 %v1440_v32, %v453_v27  ;;  %v491_v29 = vadd.f32 %v487_v61, %v426_v19  ;;  %v558_v8 = vpop.permute.xlu0 %557 }
 0x135   :  { %v486_v24 = vmul.f32 %v1440_v32, %v454_v18  ;;  %v465_v41 = vadd.f32 %v461_v17, %v400_v1  ;;  %v466_v46 = vadd.f32 %v462_v56, %v401_v36  ;;  %vm618_vm4 = vcmask 1043456  }
 0x136   :  { %v477_v52 = vadd.f32 %v473_v28, %v1465_v12  ;;  %v478_v30 = vadd.f32 %v474_v11, %v1467_v16  ;;  %v489_v25 = vadd.f32 %v485_v23, %v424_v3 }
 0x137   :  { %v490_v35 = vadd.f32 %v486_v24, %v425_v33 }
 0x138   :  { %v495_v51 = vpop.permute.xlu1 %494 }
 0x139   :  { %v503_v40 = vsel %vm500_vm13, %v1498_v53, %v495_v51  ;;  %v502_v60 = vsel %vm500_vm13, %v495_v51, %v497_v57 }
 0x13a   :  { %v521_v47 = vmul.f32 %v1432_v22, %v503_v40  ;;  %v533_v59 = vmul.f32 %v1442_v14, %v503_v40  ;;  %v514_v5 = vsel %vm1494_vm9, %v502_v60, 0.0  ;;  %v545_v49 = vmul.f32 %v1463_v58, %v503_v40 }
 0x13b   :  { %v522_v32 = vmul.f32 %v1432_v22, %v514_v5  ;;  %v534_v50 = vmul.f32 %v1442_v14, %v514_v5  ;;  %v546_v48 = vmul.f32 %v1463_v58, %v514_v5 }
 0x13c   :  { %v499_v55 = vpop.permute.xlu1 %498  ;;  %v525_v7 = vadd.f32 %v521_v47, %v464_v0  ;;  %v537_v62 = vadd.f32 %v533_v59, %v476_v54  ;;  %v549_v18 = vadd.f32 %v545_v49, %v488_v45 }
 0x13d   :  { %v501_v27 = vsel %vm500_vm13, %v497_v57, %v499_v55  ;;  %v504_v37 = vsel %vm500_vm13, %v499_v55, %v1498_v53  ;;  %v526_v19 = vadd.f32 %v522_v32, %v465_v41  ;;  %v538_v1 = vadd.f32 %v534_v50, %v477_v52 }
 0x13e   :  { %v523_v43 = vmul.f32 %v1432_v22, %v501_v27  ;;  %v535_v12 = vmul.f32 %v1442_v14, %v501_v27  ;;  %v547_v16 = vmul.f32 %v1463_v58, %v501_v27  ;;  %v516_v36 = vsel %vm1483_vm8, %v504_v37, 0.0 }
 0x13f   :  { %v550_v57 = vadd.f32 %v546_v48, %v489_v25  ;;  %v524_v53 = vmul.f32 %v1432_v22, %v516_v36  ;;  %v536_v3 = vmul.f32 %v1442_v14, %v516_v36  ;;  %v548_v17 = vmul.f32 %v1463_v58, %v516_v36 }
 0x140   :  { %v527_v61 = vadd.f32 %v523_v43, %v466_v46  ;;  %v556_v33 = vpop.permute.xlu1 %555  ;;  %v1591_v0 = vadd.f32 %v535_v12, %v478_v30  ;;  %v1599_v45 = vadd.f32 %v547_v16, %v490_v35 }
 0x141   :  { %v564_v54 = vsel %vm561_vm2, %v1557_v6, %v556_v33  ;;  %v563_v15 = vsel %vm561_vm2, %v556_v33, %v558_v8  ;;  %v528_v39 = vadd.f32 %v524_v53, %v467_v63  ;;  %v540_v14 = vadd.f32 %v536_v3, %v479_v4 }
 0x142   :  { %v578_v22 = vsel %vm1322_vm10, %v564_v54, 0.0  ;;  %v579_v56 = vsel %vm567_vm5, %v563_v15, 0.0  ;;  %v1606_v23 = vadd.f32 %v548_v17, %v491_v29  ;;  %vm569_vm10 = vmand %vm1483_vm8, %vm1353_vm15 }
 0x143   :  { %v586_v28 = vmul.f32 %v1445_v26, %v578_v22  ;;  %v598_v11 = vmul.f32 %v1476_v20, %v578_v22  ;;  %v610_v58 = vmul.f32 %v1543_v10, %v578_v22  ;;  %v587_v51 = vmul.f32 %v1445_v26, %v579_v56 }
 0x144   :  { %v599_v24 = vmul.f32 %v1476_v20, %v579_v56  ;;  %v611_v63 = vmul.f32 %v1543_v10, %v579_v56  ;;  %v560_v40 = vpop.permute.xlu1 %559 }
 0x145   :  { %v590_v60 = vadd.f32 %v586_v28, %v525_v7  ;;  %v602_v13 = vadd.f32 %v598_v11, %v537_v62  ;;  %v614_v41 = vadd.f32 %v610_v58, %v549_v18  ;;  %v562_v4 = vsel %vm561_vm2, %v558_v8, %v560_v40 }
 0x146   :  { %v591_v47 = vadd.f32 %v587_v51, %v526_v19  ;;  %v603_v59 = vadd.f32 %v599_v24, %v538_v1  ;;  %v615_v5 = vadd.f32 %v611_v63, %v550_v57  ;;  %v565_v29 = vsel %vm561_vm2, %v560_v40, %v1557_v6 }
 0x147   :  { %v619_v46 = vsel %vm618_vm4, %v590_v60, 0.0  ;;  %v653_v49 = vsel %vm618_vm4, %v602_v13, 0.0  ;;  %v687_v32 = vsel %vm618_vm4, %v614_v41, 0.0  ;;  %v580_v50 = vsel %vm1343_vm14, %v562_v4, 0.0 }
 0x148   :  { %v620_v52 = vrot.slane %v619_v46, 4  ;;  %v654_v30 = vrot.slane %v653_v49, 4  ;;  %v688_v25 = vrot.slane %v687_v32, 4  ;;  %v626_v42 = vsel %vm618_vm4, %v591_v47, 0.0 }
 0x149   :  { %v627_v44 = vrot.slane %v626_v42, 4  ;;  %v660_v48 = vsel %vm618_vm4, %v603_v59, 0.0  ;;  %v694_v34 = vsel %vm618_vm4, %v615_v5, 0.0  ;;  %v581_v6 = vsel %vm569_vm10, %v565_v29, 0.0 }
 0x14a   :  { %v621_v55 = vadd.f32 %v620_v52, %v619_v46  ;;  %v655_v35 = vadd.f32 %v654_v30, %v653_v49  ;;  %v689_v7 = vadd.f32 %v688_v25, %v687_v32  ;;  %v661_v62 = vrot.slane %v660_v48, 4 }
 0x14b   :  { %v628_v27 = vadd.f32 %v627_v44, %v626_v42  ;;  %v695_v37 = vrot.slane %v694_v34, 4  ;;  %v588_v21 = vmul.f32 %v1445_v26, %v580_v50  ;;  %v589_v43 = vmul.f32 %v1445_v26, %v581_v6 }
 0x14c   :  { %v622_v12 = vrot.slane %v621_v55, 2  ;;  %v656_v16 = vrot.slane %v655_v35, 2  ;;  %v690_v8 = vrot.slane %v689_v7, 2  ;;  %v662_v18 = vadd.f32 %v661_v62, %v660_v48 }
 0x14d   :  { %v629_v19 = vrot.slane %v628_v27, 2  ;;  %v696_v1 = vadd.f32 %v695_v37, %v694_v34  ;;  %v592_v36 = vadd.f32 %v588_v21, %v527_v61  ;;  %v593_v57 = vadd.f32 %v589_v43, %v528_v39 }
 0x14e   :  { %v623_v53 = vadd.f32 %v622_v12, %v621_v55  ;;  %v657_v3 = vadd.f32 %v656_v16, %v655_v35  ;;  %v691_v33 = vadd.f32 %v690_v8, %v689_v7  ;;  %v663_v17 = vrot.slane %v662_v18, 2 }
 0x14f   :  { %v630_v54 = vadd.f32 %v629_v19, %v628_v27  ;;  %v697_v15 = vrot.slane %v696_v1, 2  ;;  %v600_v22 = vmul.f32 %v1476_v20, %v580_v50  ;;  %v601_v56 = vmul.f32 %v1476_v20, %v581_v6 }
 0x150   :  { %v624_v28 = vrot.slane %v623_v53, 1  ;;  %v658_v26 = vrot.slane %v657_v3, 1  ;;  %v692_v11 = vrot.slane %v691_v33, 1  ;;  %v664_v58 = vadd.f32 %v663_v17, %v662_v18 }
 0x151   :  { %v631_v51 = vrot.slane %v630_v54, 1  ;;  %v698_v24 = vadd.f32 %v697_v15, %v696_v1  ;;  %v604_v63 = vadd.f32 %v600_v22, %v1591_v0  ;;  %v605_v61 = vadd.f32 %v601_v56, %v540_v14 }
 0x152   :  { %v625_v39 = vadd.f32 %v624_v28, %v623_v53  ;;  %v659_v40 = vadd.f32 %v658_v26, %v657_v3  ;;  %v693_v60 = vadd.f32 %v692_v11, %v691_v33  ;;  %v665_v13 = vrot.slane %v664_v58, 1 }
 0x153   :  { %v632_v41 = vadd.f32 %v631_v51, %v630_v54  ;;  %v699_v4 = vrot.slane %v698_v24, 1  ;;  %v612_v47 = vmul.f32 %v1543_v10, %v580_v50  ;;  %v613_v59 = vmul.f32 %v1543_v10, %v581_v6 }
 0x154   :  { %v649_v20 = vadd.f32 %v1512_v9, %v625_v39  ;;  %v683_v5 = vadd.f32 %v1514_v38, %v659_v40  ;;  %v717_v29 = vadd.f32 %v1516_v2, %v693_v60  ;;  %v666_v46 = vadd.f32 %v665_v13, %v664_v58 }
 0x155   :  { %v650_v0 = vadd.f32 %v1512_v9, %v632_v41  ;;  %v700_v14 = vadd.f32 %v699_v4, %v698_v24  ;;  %v616_v49 = vadd.f32 %v612_v47, %v1599_v45  ;;  %v617_v32 = vadd.f32 %v613_v59, %v1606_v23 }
 0x156   :  { %v721_v52 = vmax.f32 %v649_v20, %v683_v5  ;;  %v684_v30 = vadd.f32 %v1514_v38, %v666_v46  ;;  %v633_v50 = vsel %vm618_vm4, %v592_v36, 0.0  ;;  %v640_v10 = vsel %vm618_vm4, %v593_v57, 0.0 }
 0x157   :  { %v718_v25 = vadd.f32 %v1516_v2, %v700_v14  ;;  %v634_v42 = vrot.slane %v633_v50, 4  ;;  %v641_v44 = vrot.slane %v640_v10, 4  ;;  %v667_v48 = vsel %vm618_vm4, %v604_v63, 0.0 }
 0x158   :  { %v725_v34 = vmax.f32 %v721_v52, %v717_v29  ;;  %v722_v6 = vmax.f32 %v650_v0, %v684_v30  ;;  %v668_v55 = vrot.slane %v667_v48, 4  ;;  %v674_v45 = vsel %vm618_vm4, %v605_v61, 0.0 }
 0x159   :  { %v635_v35 = vadd.f32 %v634_v42, %v633_v50  ;;  %v642_v23 = vadd.f32 %v641_v44, %v640_v10  ;;  %v675_v7 = vrot.slane %v674_v45, 4  ;;  %v701_v62 = vsel %vm618_vm4, %v616_v49, 0.0 }
 0x15a   :  { %v729_v27 = vsub.f32 %v649_v20, %v725_v34  ;;  %v741_v37 = vsub.f32 %v683_v5, %v725_v34  ;;  %v753_v21 = vsub.f32 %v717_v29, %v725_v34  ;;  %v726_v43 = vmax.f32 %v722_v6, %v718_v25 }
 0x15b   :  { %v636_v12 = vrot.slane %v635_v35, 2  ;;  %v643_v16 = vrot.slane %v642_v23, 2  ;;  %v669_v8 = vadd.f32 %v668_v55, %v667_v48  ;;  %v676_v18 = vadd.f32 %v675_v7, %v674_v45 }
 0x15c   :  { %v733_v19 = vmul.f32 1.442695, %v729_v27  ;;  %v745_v1 = vmul.f32 1.442695, %v741_v37  ;;  %v757_v36 = vmul.f32 1.442695, %v753_v21  ;;  %v730_v57 = vsub.f32 %v650_v0, %v726_v43 }
 0x15d   :  { %v742_v53 = vsub.f32 %v684_v30, %v726_v43  ;;  %v754_v3 = vsub.f32 %v718_v25, %v726_v43  ;;  %v637_v33 = vadd.f32 %v636_v12, %v635_v35  ;;  %v644_v17 = vadd.f32 %v643_v16, %v642_v23 }
 0x15e   :  { %969 = vpow2.f32 %v733_v19  ;;  %v735_v54 = vmul.f32 1.442695, %v730_v57  ;;  %v670_v15 = vrot.slane %v669_v8, 2  ;;  %v677_v22 = vrot.slane %v676_v18, 2 }
 0x15f   :  { %971 = vpow2.f32 %v745_v1  ;;  %v747_v56 = vmul.f32 1.442695, %v742_v53  ;;  %v759_v28 = vmul.f32 1.442695, %v754_v3  ;;  %v638_v26 = vrot.slane %v637_v33, 1 }
 0x160   :  { %973 = vpow2.f32 %v757_v36  ;;  %v645_v11 = vrot.slane %v644_v17, 1  ;;  %v671_v58 = vadd.f32 %v670_v15, %v669_v8  ;;  %v678_v51 = vadd.f32 %v677_v22, %v676_v18 }
 0x161   :  { %975 = vpow2.f32 %v735_v54  ;;  %v639_v24 = vadd.f32 %v638_v26, %v637_v33  ;;  %v702_v63 = vrot.slane %v701_v62, 4  ;;  %v708_v61 = vsel %vm618_vm4, %v617_v32, 0.0 }
 0x162   :  { %977 = vpow2.f32 %v747_v56  ;;  %v646_v39 = vadd.f32 %v645_v11, %v644_v17  ;;  %v672_v40 = vrot.slane %v671_v58, 1  ;;  %v679_v60 = vrot.slane %v678_v51, 1 }
 0x163   :  { %979 = vpow2.f32 %v759_v28  ;;  %v703_v13 = vadd.f32 %v702_v63, %v701_v62  ;;  %v709_v41 = vrot.slane %v708_v61, 4  ;;  %v651_v4 = vadd.f32 %v1512_v9, %v639_v24 }
 0x164   :  { %v652_v47 = vadd.f32 %v1512_v9, %v646_v39  ;;  %v673_v59 = vadd.f32 %v672_v40, %v671_v58  ;;  %v680_v20 = vadd.f32 %v679_v60, %v678_v51 }
 0x165   :  { %v704_v5 = vrot.slane %v703_v13, 2  ;;  %v710_v29 = vadd.f32 %v709_v41, %v708_v61 }
 0x166   :  { %v685_v46 = vadd.f32 %v1514_v38, %v673_v59  ;;  %v686_v0 = vadd.f32 %v1514_v38, %v680_v20 }
 0x167   :  { %v705_v14 = vadd.f32 %v704_v5, %v703_v13  ;;  %v711_v49 = vrot.slane %v710_v29, 2  ;;  %v795_v5 = vshrl.u32 %v54_v31, 7 }
 0x168   :  { %v970_v32 = vpop.eup %969  ;;  %v723_v52 = vmax.f32 %v651_v4, %v685_v46  ;;  %v724_v30 = vmax.f32 %v652_v47, %v686_v0 }
 0x169   :  { %v972_v50 = vpop.eup %971  ;;  %v706_v10 = vrot.slane %v705_v14, 1  ;;  %v712_v25 = vadd.f32 %v711_v49, %v710_v29 }
 0x16a   :  { %v974_v42 = vpop.eup %973  ;;  %v765_v44 = vadd.f32 %v972_v50, %v970_v32 }
 0x16b   :  { %v976_v48 = vpop.eup %975  ;;  %v707_v9 = vadd.f32 %v706_v10, %v705_v14  ;;  %v713_v34 = vrot.slane %v712_v25, 1 }
 0x16c   :  { %v978_v6 = vpop.eup %977  ;;  %v769_v55 = vadd.f32 %v974_v42, %v765_v44 }
 0x16d   :  { %v980_v45 = vpop.eup %979  ;;  %v766_v35 = vadd.f32 %v978_v6, %v976_v48  ;;  %v714_v23 = vadd.f32 %v713_v34, %v712_v25  ;;  %v719_v38 = vadd.f32 %v1516_v2, %v707_v9 }
 0x16e   :  { %981 = vrcp.f32 %v769_v55 }
 0x16f   :  { %v770_v7 = vadd.f32 %v980_v45, %v766_v35  ;;  %v720_v62 = vadd.f32 %v1516_v2, %v714_v23  ;;  %v727_v27 = vmax.f32 %v723_v52, %v719_v38 }
 0x171   :  { %983 = vrcp.f32 %v770_v7  ;;  %v728_v37 = vmax.f32 %v724_v30, %v720_v62  ;;  %v731_v21 = vsub.f32 %v651_v4, %v727_v27  ;;  %v743_v43 = vsub.f32 %v685_v46, %v727_v27 }
 0x172   :  { %v755_v12 = vsub.f32 %v719_v38, %v727_v27 }
 0x173   :  { %v732_v16 = vsub.f32 %v652_v47, %v728_v37  ;;  %v737_v8 = vmul.f32 1.442695, %v731_v21  ;;  %v744_v18 = vsub.f32 %v686_v0, %v728_v37  ;;  %v749_v19 = vmul.f32 1.442695, %v743_v43 }
 0x174   :  { %v756_v1 = vsub.f32 %v720_v62, %v728_v37  ;;  %v761_v53 = vmul.f32 1.442695, %v755_v12  ;;  %v1101_v47 = vmov 1966171168  }
 0x175   :  { %985 = vpow2.f32 %v737_v8  ;;  %v739_v36 = vmul.f32 1.442695, %v732_v16  ;;  %v751_v57 = vmul.f32 1.442695, %v744_v18  ;;  %v792_v59 = vunpack.c.l.s4 %v1101_v47 }
 0x176   :  { %987 = vpow2.f32 %v749_v19  ;;  %v763_v3 = vmul.f32 1.442695, %v756_v1 }
 0x177   :  { %989 = vpow2.f32 %v739_v36  ;;  %v793_v20 = vunpack.c.0.s8 %v792_v59 }
 0x178   :  { %v982_v33 = vpop.eup %981  ;;  %991 = vpow2.f32 %v751_v57 }
 0x179   :  { %v781_v2 = vmul.f32 %v982_v33, %v970_v32  ;;  %v819_v17 = vmul.f32 %v982_v33, %v972_v50  ;;  %v854_v54 = vmul.f32 %v982_v33, %v974_v42  ;;  %993 = vpow2.f32 %v761_v53 }
 0x17a   :  { %995 = vpow2.f32 %v763_v3  ;;  %v796_v0 = vsub.s32 %v793_v20, %v795_v5 }
 0x17b   :  { %v984_v15 = vpop.eup %983 }
 0x17c   :  { %v782_v22 = vmul.f32 %v984_v15, %v976_v48  ;;  %v820_v56 = vmul.f32 %v984_v15, %v978_v6  ;;  %v855_v28 = vmul.f32 %v984_v15, %v980_v45 }
 0x17e   :  { %v789_v26 = vcombine.low %v781_v2, %v782_v22  ;;  %v827_v11 = vcombine.low %v819_v17, %v820_v56  ;;  %v862_v58 = vcombine.low %v854_v54, %v855_v28 }
 0x17f   :  { %v986_v51 = vpop.eup %985 }
 0x180   :  { %v988_v24 = vpop.eup %987  ;;  %v797_v44 = vrot.slane %v789_v26, %v796_v0  ;;  %v835_v48 = vrot.slane %v827_v11, %v796_v0  ;;  %v870_v9 = vrot.slane %v862_v58, %v796_v0 }
 0x181   :  { %v990_v63 = vpop.eup %989  ;;  %v767_v61 = vadd.f32 %v988_v24, %v986_v51 }
 0x182   :  { %v992_v39 = vpop.eup %991 }
 0x183   :  { %v994_v40 = vpop.eup %993  ;;  %v768_v60 = vadd.f32 %v992_v39, %v990_v63 }
 0x184   :  { %v996_v13 = vpop.eup %995  ;;  %v771_v41 = vadd.f32 %v994_v40, %v767_v61 }
 0x185   :  { %v772_v4 = vadd.f32 %v996_v13, %v768_v60 }
 0x186   :  { %997 = vrcp.f32 %v771_v41 }
 0x187   :  { %999 = vrcp.f32 %v772_v4 }
 0x190   :  { %v998_v29 = vpop.eup %997 }
 0x191   :  { %v1000_v46 = vpop.eup %999  ;;  %v783_v14 = vmul.f32 %v998_v29, %v986_v51  ;;  %v821_v49 = vmul.f32 %v998_v29, %v988_v24  ;;  %v856_v32 = vmul.f32 %v998_v29, %v994_v40 }
 0x192   :  { %v784_v52 = vmul.f32 %v1000_v46, %v990_v63  ;;  %v822_v30 = vmul.f32 %v1000_v46, %v992_v39  ;;  %v857_v50 = vmul.f32 %v1000_v46, %v996_v13 }
 0x194   :  { %v790_v10 = vcombine.low %v783_v14, %v784_v52  ;;  %v828_v25 = vcombine.low %v821_v49, %v822_v30  ;;  %v863_v42 = vcombine.low %v856_v32, %v857_v50 }
 0x196   :  { %v804_v34 = vrot.slane %v790_v10, %v796_v0  ;;  %v842_v6 = vrot.slane %v828_v25, %v796_v0  ;;  %v877_v55 = vrot.slane %v863_v42, %v796_v0 }
 0x198   :  { %v805_v45 = vcombine.low %v797_v44, %v804_v34  ;;  %v843_v35 = vcombine.low %v835_v48, %v842_v6  ;;  %v878_v23 = vcombine.low %v870_v9, %v877_v55 }
 0x19a   :  { %v812_v38 = vrot.slane %v805_v45, %v796_v0  ;;  %v850_v7 = vrot.slane %v843_v35, %v796_v0  ;;  %v885_v62 = vrot.slane %v878_v23, %v796_v0 }
 0x19c   :  { %818 = vst.msk [vmem:[%s1669_s3] ss:$4 sm:$0xf] %vm816_vm12, %v812_v38  ;;  %898 = vst.msk [vmem:[%s1669_s3 + $0x1] ss:$4 sm:$0xf] %vm816_vm12, %v850_v7 }
 0x19d   :  { %899 = vst.msk [vmem:[%s1669_s3 + $0x2] ss:$4 sm:$0xf] %vm816_vm12, %v885_v62 }
 0x19e   :  { %893 = vsyncpa [#allocation3], 1 }
 0x19f   :  { %894 = vsyncpa [#allocation6], 1 }
 0x1a0   :  { %895 = vsyncpa [#allocation4], 1 }

</bundles_post_ra>
